<compile_context>
chip_gen: v6e
topology: v6e:2x2x1
jax: 0.10.0
libtpu: 0.0.40
codegen_flags: <defaults>
</compile_context>

<pallas_src>
import jax
import jax.numpy as jnp
from jax.experimental import pallas as pl
from jax.experimental.pallas import tpu as pltpu


# ----------------------------------------------------------------------------
# Fused refinement-stage kernel
# ----------------------------------------------------------------------------
def _make_stage_kernel(n_levels, stage_depth, has_prev, hidden):
    def mxu(a, b):
        # bf16 operands, f32 accumulation on the MXU.
        return jnp.dot(a.astype(jnp.bfloat16), b.astype(jnp.bfloat16),
                       preferred_element_type=jnp.float32)

    def vpu_mm(a, b):
        # (M, K) @ (K, N) with tiny K (<=4): unrolled VPU outer-product
        # accumulation -- an MXU pass would waste the whole systolic array.
        out = a[:, 0:1] * b[0:1, :]
        for k in range(1, a.shape[1]):
            out = out + a[:, k:k + 1] * b[k:k + 1, :]
        return out

    def kernel(*refs):
        it = iter(refs)
        levels = [(next(it), next(it), next(it)) for _ in range(n_levels)]
        bb_ref = next(it)
        pos_ref = next(it)
        prev_ref = next(it) if has_prev else None
        adj_ref = next(it)
        gconvs = []
        for li in range(stage_depth):
            wf, wp = next(it), next(it)
            wprev = next(it) if (li == 0 and has_prev) else None
            gconvs.append((wf, wp, wprev, next(it)))
        wo_f, wo_p, bo_ref = next(it), next(it), next(it)
        off_ref, featout_ref = next(it), next(it)

        # --- vert_align (grid-sample as MXU matmul) + bottleneck Linear + ReLU ---
        # relu(concat_l(samp_l @ feat_l) @ Wb + bb)
        #   == relu(sum_l (samp_l @ feat_l) @ Wb_l + bb)   (Wb pre-split per level)
        acc = bb_ref[...]                                     # (1, hidden)
        for samp_ref, feat_ref, wb_ref in levels:
            sampled = mxu(samp_ref[0], feat_ref[0])           # (Nv, C_l)
            acc = acc + vpu_mm(sampled, wb_ref[...])          # (Nv, hidden)
        h = jnp.maximum(acc, 0.0)

        pos = pos_ref[0]                                      # (Nv, 3)
        adj = adj_ref[0]                                      # (Nv, Nv), 0/1

        # --- GraphConv stack (undirected gather_scatter == symmetric adj matmul) ---
        cur = h
        for li, (wf, wp, wprev, b01) in enumerate(gconvs):
            # [y0 | y1] = [feat | pos | prev] @ [W0 | W1] + [b0 | b1],
            # with the input concat replaced by pre-split weights.
            y01 = mxu(cur, wf[...]) + vpu_mm(pos, wp[...]) + b01[...]
            if wprev is not None:
                y01 = y01 + mxu(prev_ref[0], wprev[...])
            y0 = y01[:, :hidden]
            y1 = y01[:, hidden:]
            cur = jnp.maximum(y0 + mxu(adj, y1), 0.0)

        # --- vert_offset Linear + tanh ---
        off = jnp.tanh(mxu(cur, wo_f[...]) + vpu_mm(pos, wo_p[...]) + bo_ref[...])
        off_ref[0] = off
        featout_ref[0] = cur

    return kernel


def fused_stage_call(samp_list, feat_list, wb_list, pos, prev, adj, params, hidden):
    """One pallas_call for a full MeshRefinementStage (per-mesh grid over B)."""
    B, Nv, _ = pos.shape
    n_levels = len(samp_list)
    has_prev = prev is not None
    stage_depth = len(params["gconvs"])

    args, in_specs = [], []

    def add_batched(arr):
        args.append(arr)
        blk = (1,) + arr.shape[1:]
        in_specs.append(pl.BlockSpec(blk, lambda b: (b, 0, 0)))

    def add_shared(arr):
        args.append(arr)
        nd = arr.ndim
        in_specs.append(pl.BlockSpec(arr.shape, lambda b: (0,) * nd))

    for s, f, wbl in zip(samp_list, feat_list, wb_list):
        add_batched(s)          # (B, Nv, HW_l) bilinear sampling weights
        add_batched(f)          # (B, HW_l, C_l) flattened image features
        add_shared(wbl)         # (C_l, hidden) bottleneck weight slice
    add_shared(params["bottleneck_b"])          # (1, hidden)
    add_batched(pos)                            # (B, Nv, 3)
    if has_prev:
        add_batched(prev)                       # (B, Nv, hidden)
    add_batched(adj)                            # (B, Nv, Nv)
    for li, g in enumerate(params["gconvs"]):
        add_shared(g["w01_feat"])               # (hidden, 2*hidden)
        add_shared(g["w01_pos"])                # (3, 2*hidden)
        if li == 0 and has_prev:
            add_shared(g["w01_prev"])           # (hidden, 2*hidden)
        add_shared(g["b01"])                    # (1, 2*hidden)
    add_shared(params["vert_offset_w_feat"])    # (hidden, 3)
    add_shared(params["vert_offset_w_pos"])     # (3, 3)
    add_shared(params["vert_offset_b"])         # (1, 3)

    kernel = _make_stage_kernel(n_levels, stage_depth, has_prev, hidden)

    out_shape = (jax.ShapeDtypeStruct((B, Nv, 3), jnp.float32),
                 jax.ShapeDtypeStruct((B, Nv, hidden), jnp.float32))
    out_specs = (pl.BlockSpec((1, Nv, 3), lambda b: (b, 0, 0)),
                 pl.BlockSpec((1, Nv, hidden), lambda b: (b, 0, 0)))

    return pl.pallas_call(
        kernel,
        out_shape=out_shape,
        grid=(B,),
        in_specs=in_specs,
        out_specs=out_specs,
        compiler_params=pltpu.CompilerParams(
            dimension_semantics=("parallel",)),   # one mesh per TC on v7x megacore
    )(*args)


# ----------------------------------------------------------------------------
# vert_align sampling matrix (bilinear grid-sample, align_corners=True, zeros pad)
# Built with dense XLA ops (no gathers); the actual sampling runs on the MXU
# inside the fused kernel as  weights @ feat_flat.
# ----------------------------------------------------------------------------
def bilinear_sampling_matrix(verts_xy, H, W):
    """verts_xy: (B, Nv, 2) in [-1, 1]; returns (B, Nv, H*W) f32 weights."""
    x = (verts_xy[..., 0] + 1.0) * 0.5 * (W - 1)
    y = (verts_xy[..., 1] + 1.0) * 0.5 * (H - 1)
    x0 = jnp.floor(x)
    y0 = jnp.floor(y)
    x1 = x0 + 1.0
    y1 = y0 + 1.0
    corners = [
        (x0, y0, (x1 - x) * (y1 - y)),
        (x1, y0, (x - x0) * (y1 - y)),
        (x0, y1, (x1 - x) * (y - y0)),
        (x1, y1, (x - x0) * (y - y0)),
    ]
    col = jnp.arange(H * W, dtype=jnp.int32)
    mat = jnp.zeros(verts_xy.shape[:-1] + (H * W,), jnp.float32)
    for cx, cy, w in corners:
        valid = ((cx >= 0) & (cx <= W - 1) & (cy >= 0) & (cy <= H - 1)).astype(jnp.float32)
        xi = jnp.clip(cx, 0, W - 1).astype(jnp.int32)
        yi = jnp.clip(cy, 0, H - 1).astype(jnp.int32)
        flat = yi * W + xi                                        # (B, Nv)
        onehot = (col[None, None, :] == flat[..., None]).astype(jnp.float32)
        mat = mat + onehot * (w * valid)[..., None]
    return mat


# ----------------------------------------------------------------------------
# MeshRefinementStage / MeshRefinementHead forward (functional)
# ----------------------------------------------------------------------------
def init_stage_params(key, img_feat_dim, vert_feat_dim, hidden_dim, stage_depth):
    keys = iter(jax.random.split(key, 1 + 3 * stage_depth))
    params = {
        # bottleneck: normal(0, 0.01) weights, zero bias
        "bottleneck_w": 0.01 * jax.random.normal(next(keys), (img_feat_dim, hidden_dim), jnp.float32),
        "bottleneck_b": jnp.zeros((1, hidden_dim), jnp.float32),
        # vert_offset: zero weights / bias, stored pre-split into feat / pos parts
        "vert_offset_w_feat": jnp.zeros((hidden_dim, 3), jnp.float32),
        "vert_offset_w_pos": jnp.zeros((3, 3), jnp.float32),
        "vert_offset_b": jnp.zeros((1, 3), jnp.float32),
        "gconvs": [],
    }
    for i in range(stage_depth):
        # GraphConv weights: normal(0, 0.01), zero bias.  Stored as the fused
        # [W0 | W1] (output axis) layout, pre-split by input block
        # ([feat | pos | prev] in the original concat order).
        g = {
            "w01_feat": 0.01 * jax.random.normal(next(keys), (hidden_dim, 2 * hidden_dim), jnp.float32),
            "w01_pos": 0.01 * jax.random.normal(next(keys), (3, 2 * hidden_dim), jnp.float32),
            "b01": jnp.zeros((1, 2 * hidden_dim), jnp.float32),
        }
        if i == 0 and vert_feat_dim > 0:
            g["w01_prev"] = 0.01 * jax.random.normal(
                next(keys), (vert_feat_dim, 2 * hidden_dim), jnp.float32)
        params["gconvs"].append(g)
    return params


def stage_forward(params, img_feats, mesh, vert_feats=None):
    verts_padded = mesh["verts_padded"]                 # (B, Nv, 3)
    B, Nv, _ = verts_padded.shape
    hidden = params["bottleneck_w"].shape[1]

    # TODO(synk): project_verts (Ps != None path) not implemented; P is None here.
    factor = jnp.array([1.0, -1.0, 1.0], jnp.float32)
    sample_coords = verts_padded * factor               # only used for vert_align

    samp_list, feat_list, wb_list = [], [], []
    c_off = 0
    for feat in img_feats:                              # (B, V, C, H, W)
        _, V, C, H, W = feat.shape
        if V != 1:
            # TODO(synk): multi-view fusion callback not provided; single-view only.
            raise ValueError("feat_fusion_callback None with multi-view features")
        samp_list.append(bilinear_sampling_matrix(sample_coords[..., :2], H, W))
        feat_list.append(feat[:, 0].reshape(B, C, H * W).transpose(0, 2, 1))
        wb_list.append(params["bottleneck_w"][c_off:c_off + C])
        c_off += C

    # Equal-size meshes: verts_padded_to_packed_idx is the identity, so the
    # padded/packed views coincide per mesh -- no gather needed.
    # TODO(synk): ragged (unequal-size) mesh batches would need a real packing
    # step (scalar-prefetch index_map) here.
    offsets, vert_feats_nopos = fused_stage_call(
        samp_list, feat_list, wb_list, verts_padded, vert_feats,
        mesh["adj"], params, hidden)

    new_padded = verts_padded + offsets                 # offset_verts
    mesh_out = dict(mesh)
    mesh_out["verts_padded"] = new_padded
    mesh_out["verts_packed"] = new_padded.reshape(B * Nv, 3)
    return mesh_out, vert_feats_nopos, None


def head_forward(stage_params_list, feats_extractor, mesh):
    # MeshRefinementHead.forward with P=None, subdivide=False.
    # TODO(synk): SubdivideMeshes (subdivide=True path) not implemented.
    output_meshes, output_feats, output_feats_weights = [], [], []
    vert_feats = None
    for params in stage_params_list:
        feats = feats_extractor(mesh)
        mesh, vert_feats, view_weights = stage_forward(
            params, feats["img_feats"], mesh, vert_feats)
        output_meshes.append(mesh)
        output_feats.append(feats)
        output_feats_weights.append(view_weights)
    return output_meshes, output_feats, output_feats_weights


# ----------------------------------------------------------------------------
# Synthetic mesh + features
# ----------------------------------------------------------------------------
def build_mesh(key, B=2, grid_n=8):
    Nv = grid_n * grid_n
    ys, xs = jnp.meshgrid(jnp.linspace(-0.9, 0.9, grid_n),
                          jnp.linspace(-0.9, 0.9, grid_n), indexing="ij")
    z = jax.random.uniform(key, (grid_n, grid_n), minval=-0.5, maxval=0.5)
    base = jnp.stack([xs, ys, z], axis=-1).reshape(Nv, 3).astype(jnp.float32)
    verts_padded = jnp.stack(
        [base * (1.0 - 0.2 * b) + 0.05 * b for b in range(B)], axis=0)   # (B, Nv, 3)

    # grid-mesh edges (same topology per mesh); no duplicate / self edges, so the
    # symmetric 0/1 adjacency matmul is exactly pytorch3d's undirected
    # gather_scatter.
    edges = []
    for r in range(grid_n):
        for c in range(grid_n):
            i = r * grid_n + c
            if c + 1 < grid_n:
                edges.append((i, i + 1))
            if r + 1 < grid_n:
                edges.append((i, i + grid_n))
    edges = jnp.array(edges, dtype=jnp.int32)

    adj1 = jnp.zeros((Nv, Nv), jnp.float32)
    adj1 = adj1.at[edges[:, 0], edges[:, 1]].set(1.0)
    adj1 = adj1.at[edges[:, 1], edges[:, 0]].set(1.0)
    # Per-mesh (block-diagonal) adjacency; 0/1 is exact in bf16 and halves DMA.
    adj = jnp.tile(adj1[None], (B, 1, 1)).astype(jnp.bfloat16)

    edges_packed = jnp.concatenate([edges + b * Nv for b in range(B)], axis=0)

    return {
        "verts_padded": verts_padded,
        "verts_packed": verts_padded.reshape(B * Nv, 3),
        "edges_packed": edges_packed,
        "adj": adj,                                         # (B, Nv, Nv)
        "verts_padded_to_packed_idx": jnp.arange(B * Nv, dtype=jnp.int32),
    }


if __name__ == "__main__":
    key = jax.random.PRNGKey(0)
    k_mesh, k_f1, k_f2, k_s0, k_s1 = jax.random.split(key, 5)

    # cfg: COMPUTED_INPUT_CHANNELS=8 (4+4), NUM_STAGES=2, GRAPH_CONV_DIM=32, NUM_GRAPH_CONVS=2
    B, V = 2, 1
    input_channels, num_stages, hidden_dim, stage_depth = 8, 2, 32, 2

    mesh = build_mesh(k_mesh, B=B, grid_n=8)

    feat1 = jax.random.normal(k_f1, (B, V, 4, 16, 16), jnp.float32)
    feat2 = jax.random.normal(k_f2, (B, V, 4, 8, 8), jnp.float32)

    def feats_extractor(_mesh):
        return {"img_feats": [feat1, feat2]}

    stage_params = [
        init_stage_params(k_s0, input_channels, 0, hidden_dim, stage_depth),
        init_stage_params(k_s1, input_channels, hidden_dim, hidden_dim, stage_depth),
    ]

    output_meshes, output_feats, output_feats_weights = head_forward(
        stage_params, feats_extractor, mesh)

    jax.block_until_ready(output_meshes[-1]["verts_packed"])
    assert output_meshes[-1]["verts_packed"].shape == (B * 64, 3)
    assert output_meshes[-1]["verts_padded"].shape == (B, 64, 3)
    print("KERNEL_OK")
</pallas_src>

<mosaic_0001>
module attributes {stable_mosaic.version = 11 : i64} {
  func.func @kernel(%arg0: i32, %arg1: memref<1x64x256xf32, #tpu.memory_space<vmem>>, %arg2: memref<1x256x4xf32, #tpu.memory_space<vmem>>, %arg3: memref<4x32xf32, #tpu.memory_space<vmem>>, %arg4: memref<1x64x64xf32, #tpu.memory_space<vmem>>, %arg5: memref<1x64x4xf32, #tpu.memory_space<vmem>>, %arg6: memref<4x32xf32, #tpu.memory_space<vmem>>, %arg7: memref<1x32xf32, #tpu.memory_space<vmem>>, %arg8: memref<1x64x3xf32, #tpu.memory_space<vmem>>, %arg9: memref<1x64x64xbf16, #tpu.memory_space<vmem>>, %arg10: memref<32x64xf32, #tpu.memory_space<vmem>>, %arg11: memref<3x64xf32, #tpu.memory_space<vmem>>, %arg12: memref<1x64xf32, #tpu.memory_space<vmem>>, %arg13: memref<32x64xf32, #tpu.memory_space<vmem>>, %arg14: memref<3x64xf32, #tpu.memory_space<vmem>>, %arg15: memref<1x64xf32, #tpu.memory_space<vmem>>, %arg16: memref<32x3xf32, #tpu.memory_space<vmem>>, %arg17: memref<3x3xf32, #tpu.memory_space<vmem>>, %arg18: memref<1x3xf32, #tpu.memory_space<vmem>>, %arg19: memref<1x64x3xf32, #tpu.memory_space<vmem>>, %arg20: memref<1x64x32xf32, #tpu.memory_space<vmem>>) attributes {dimension_semantics = [#tpu.dimension_semantics<parallel>], iteration_bounds = array<i64: 2>, scalar_prefetch = 0 : i64, scratch_operands = 0 : i64, tpu.core_type = #tpu.core_type<tc>, window_params = [{transform_indices = @transform_0, window_bounds = array<i64: 1, 64, 256>}, {transform_indices = @transform_1, window_bounds = array<i64: 1, 256, 4>}, {pipeline_mode = #tpu.pipeline_mode<synchronous>, transform_indices = @transform_2, window_bounds = array<i64: 4, 32>}, {transform_indices = @transform_3, window_bounds = array<i64: 1, 64, 64>}, {transform_indices = @transform_4, window_bounds = array<i64: 1, 64, 4>}, {pipeline_mode = #tpu.pipeline_mode<synchronous>, transform_indices = @transform_5, window_bounds = array<i64: 4, 32>}, {pipeline_mode = #tpu.pipeline_mode<synchronous>, transform_indices = @transform_6, window_bounds = array<i64: 1, 32>}, {transform_indices = @transform_7, window_bounds = array<i64: 1, 64, 3>}, {transform_indices = @transform_8, window_bounds = array<i64: 1, 64, 64>}, {pipeline_mode = #tpu.pipeline_mode<synchronous>, transform_indices = @transform_9, window_bounds = array<i64: 32, 64>}, {pipeline_mode = #tpu.pipeline_mode<synchronous>, transform_indices = @transform_10, window_bounds = array<i64: 3, 64>}, {pipeline_mode = #tpu.pipeline_mode<synchronous>, transform_indices = @transform_11, window_bounds = array<i64: 1, 64>}, {pipeline_mode = #tpu.pipeline_mode<synchronous>, transform_indices = @transform_12, window_bounds = array<i64: 32, 64>}, {pipeline_mode = #tpu.pipeline_mode<synchronous>, transform_indices = @transform_13, window_bounds = array<i64: 3, 64>}, {pipeline_mode = #tpu.pipeline_mode<synchronous>, transform_indices = @transform_14, window_bounds = array<i64: 1, 64>}, {pipeline_mode = #tpu.pipeline_mode<synchronous>, transform_indices = @transform_15, window_bounds = array<i64: 32, 3>}, {pipeline_mode = #tpu.pipeline_mode<synchronous>, transform_indices = @transform_16, window_bounds = array<i64: 3, 3>}, {pipeline_mode = #tpu.pipeline_mode<synchronous>, transform_indices = @transform_17, window_bounds = array<i64: 1, 3>}, {transform_indices = @transform_18, window_bounds = array<i64: 1, 64, 3>}, {transform_indices = @transform_19, window_bounds = array<i64: 1, 64, 32>}]} {
    %c0 = arith.constant 0 : index
    %c0_0 = arith.constant 0 : index
    %0 = vector.load %arg7[%c0, %c0_0] : memref<1x32xf32, #tpu.memory_space<vmem>>, vector<1x32xf32>
    %c0_1 = arith.constant 0 : index
    %c0_2 = arith.constant 0 : index
    %c0_3 = arith.constant 0 : index
    %1 = vector.load %arg1[%c0_1, %c0_2, %c0_3] : memref<1x64x256xf32, #tpu.memory_space<vmem>>, vector<1x64x256xf32>
    %2 = vector.shape_cast %1 : vector<1x64x256xf32> to vector<64x256xf32>
    %c0_4 = arith.constant 0 : index
    %c0_5 = arith.constant 0 : index
    %c0_6 = arith.constant 0 : index
    %3 = vector.load %arg2[%c0_4, %c0_5, %c0_6] : memref<1x256x4xf32, #tpu.memory_space<vmem>>, vector<1x256x4xf32>
    %4 = vector.shape_cast %3 : vector<1x256x4xf32> to vector<256x4xf32>
    %5 = arith.truncf %2 : vector<64x256xf32> to vector<64x256xbf16>
    %6 = arith.truncf %4 : vector<256x4xf32> to vector<256x4xbf16>
    %cst = arith.constant dense<0.000000e+00> : vector<64x4xf32>
    %7 = tpu.matmul %5, %6, %cst {dimension_numbers = #tpu.dot_dimension_numbers<[1], [0], [0], [1], [0, 0, 1, 1], [], []>} : vector<64x256xbf16>, vector<256x4xbf16>, vector<64x4xf32> -> vector<64x4xf32>
    %c0_7 = arith.constant 0 : index
    %c0_8 = arith.constant 0 : index
    %8 = vector.load %arg3[%c0_7, %c0_8] : memref<4x32xf32, #tpu.memory_space<vmem>>, vector<4x32xf32>
    %9 = vector.extract_strided_slice %7 {offsets = [0, 0], sizes = [64, 1], strides = [1, 1]} : vector<64x4xf32> to vector<64x1xf32>
    %10 = vector.extract_strided_slice %8 {offsets = [0, 0], sizes = [1, 32], strides = [1, 1]} : vector<4x32xf32> to vector<1x32xf32>
    %11 = vector.broadcast %9 : vector<64x1xf32> to vector<64x32xf32>
    %12 = vector.broadcast %10 : vector<1x32xf32> to vector<64x32xf32>
    %13 = arith.mulf %11, %12 : vector<64x32xf32>
    %14 = vector.extract_strided_slice %7 {offsets = [0, 1], sizes = [64, 1], strides = [1, 1]} : vector<64x4xf32> to vector<64x1xf32>
    %15 = vector.extract_strided_slice %8 {offsets = [1, 0], sizes = [1, 32], strides = [1, 1]} : vector<4x32xf32> to vector<1x32xf32>
    %16 = vector.broadcast %14 : vector<64x1xf32> to vector<64x32xf32>
    %17 = vector.broadcast %15 : vector<1x32xf32> to vector<64x32xf32>
    %18 = arith.mulf %16, %17 : vector<64x32xf32>
    %19 = arith.addf %13, %18 : vector<64x32xf32>
    %20 = vector.extract_strided_slice %7 {offsets = [0, 2], sizes = [64, 1], strides = [1, 1]} : vector<64x4xf32> to vector<64x1xf32>
    %21 = vector.extract_strided_slice %8 {offsets = [2, 0], sizes = [1, 32], strides = [1, 1]} : vector<4x32xf32> to vector<1x32xf32>
    %22 = vector.broadcast %20 : vector<64x1xf32> to vector<64x32xf32>
    %23 = vector.broadcast %21 : vector<1x32xf32> to vector<64x32xf32>
    %24 = arith.mulf %22, %23 : vector<64x32xf32>
    %25 = arith.addf %19, %24 : vector<64x32xf32>
    %26 = vector.extract_strided_slice %7 {offsets = [0, 3], sizes = [64, 1], strides = [1, 1]} : vector<64x4xf32> to vector<64x1xf32>
    %27 = vector.extract_strided_slice %8 {offsets = [3, 0], sizes = [1, 32], strides = [1, 1]} : vector<4x32xf32> to vector<1x32xf32>
    %28 = vector.broadcast %26 : vector<64x1xf32> to vector<64x32xf32>
    %29 = vector.broadcast %27 : vector<1x32xf32> to vector<64x32xf32>
    %30 = arith.mulf %28, %29 : vector<64x32xf32>
    %31 = arith.addf %25, %30 : vector<64x32xf32>
    %32 = vector.broadcast %0 : vector<1x32xf32> to vector<64x32xf32>
    %33 = arith.addf %32, %31 : vector<64x32xf32>
    %c0_9 = arith.constant 0 : index
    %c0_10 = arith.constant 0 : index
    %c0_11 = arith.constant 0 : index
    %34 = vector.load %arg4[%c0_9, %c0_10, %c0_11] : memref<1x64x64xf32, #tpu.memory_space<vmem>>, vector<1x64x64xf32>
    %35 = vector.shape_cast %34 : vector<1x64x64xf32> to vector<64x64xf32>
    %c0_12 = arith.constant 0 : index
    %c0_13 = arith.constant 0 : index
    %c0_14 = arith.constant 0 : index
    %36 = vector.load %arg5[%c0_12, %c0_13, %c0_14] : memref<1x64x4xf32, #tpu.memory_space<vmem>>, vector<1x64x4xf32>
    %37 = vector.shape_cast %36 : vector<1x64x4xf32> to vector<64x4xf32>
    %38 = arith.truncf %35 : vector<64x64xf32> to vector<64x64xbf16>
    %39 = arith.truncf %37 : vector<64x4xf32> to vector<64x4xbf16>
    %cst_15 = arith.constant dense<0.000000e+00> : vector<64x4xf32>
    %40 = tpu.matmul %38, %39, %cst_15 {dimension_numbers = #tpu.dot_dimension_numbers<[1], [0], [0], [1], [0, 0, 1, 1], [], []>} : vector<64x64xbf16>, vector<64x4xbf16>, vector<64x4xf32> -> vector<64x4xf32>
    %c0_16 = arith.constant 0 : index
    %c0_17 = arith.constant 0 : index
    %41 = vector.load %arg6[%c0_16, %c0_17] : memref<4x32xf32, #tpu.memory_space<vmem>>, vector<4x32xf32>
    %42 = vector.extract_strided_slice %40 {offsets = [0, 0], sizes = [64, 1], strides = [1, 1]} : vector<64x4xf32> to vector<64x1xf32>
    %43 = vector.extract_strided_slice %41 {offsets = [0, 0], sizes = [1, 32], strides = [1, 1]} : vector<4x32xf32> to vector<1x32xf32>
    %44 = vector.broadcast %42 : vector<64x1xf32> to vector<64x32xf32>
    %45 = vector.broadcast %43 : vector<1x32xf32> to vector<64x32xf32>
    %46 = arith.mulf %44, %45 : vector<64x32xf32>
    %47 = vector.extract_strided_slice %40 {offsets = [0, 1], sizes = [64, 1], strides = [1, 1]} : vector<64x4xf32> to vector<64x1xf32>
    %48 = vector.extract_strided_slice %41 {offsets = [1, 0], sizes = [1, 32], strides = [1, 1]} : vector<4x32xf32> to vector<1x32xf32>
    %49 = vector.broadcast %47 : vector<64x1xf32> to vector<64x32xf32>
    %50 = vector.broadcast %48 : vector<1x32xf32> to vector<64x32xf32>
    %51 = arith.mulf %49, %50 : vector<64x32xf32>
    %52 = arith.addf %46, %51 : vector<64x32xf32>
    %53 = vector.extract_strided_slice %40 {offsets = [0, 2], sizes = [64, 1], strides = [1, 1]} : vector<64x4xf32> to vector<64x1xf32>
    %54 = vector.extract_strided_slice %41 {offsets = [2, 0], sizes = [1, 32], strides = [1, 1]} : vector<4x32xf32> to vector<1x32xf32>
    %55 = vector.broadcast %53 : vector<64x1xf32> to vector<64x32xf32>
    %56 = vector.broadcast %54 : vector<1x32xf32> to vector<64x32xf32>
    %57 = arith.mulf %55, %56 : vector<64x32xf32>
    %58 = arith.addf %52, %57 : vector<64x32xf32>
    %59 = vector.extract_strided_slice %40 {offsets = [0, 3], sizes = [64, 1], strides = [1, 1]} : vector<64x4xf32> to vector<64x1xf32>
    %60 = vector.extract_strided_slice %41 {offsets = [3, 0], sizes = [1, 32], strides = [1, 1]} : vector<4x32xf32> to vector<1x32xf32>
    %61 = vector.broadcast %59 : vector<64x1xf32> to vector<64x32xf32>
    %62 = vector.broadcast %60 : vector<1x32xf32> to vector<64x32xf32>
    %63 = arith.mulf %61, %62 : vector<64x32xf32>
    %64 = arith.addf %58, %63 : vector<64x32xf32>
    %65 = arith.addf %33, %64 : vector<64x32xf32>
    %cst_18 = arith.constant 0.000000e+00 : f32
    %66 = vector.broadcast %cst_18 : f32 to vector<64x32xf32>
    %67 = arith.maximumf %65, %66 : vector<64x32xf32>
    %c0_19 = arith.constant 0 : index
    %c0_20 = arith.constant 0 : index
    %c0_21 = arith.constant 0 : index
    %68 = vector.load %arg8[%c0_19, %c0_20, %c0_21] : memref<1x64x3xf32, #tpu.memory_space<vmem>>, vector<1x64x3xf32>
    %69 = vector.shape_cast %68 : vector<1x64x3xf32> to vector<64x3xf32>
    %c0_22 = arith.constant 0 : index
    %c0_23 = arith.constant 0 : index
    %c0_24 = arith.constant 0 : index
    %70 = vector.load %arg9[%c0_22, %c0_23, %c0_24] : memref<1x64x64xbf16, #tpu.memory_space<vmem>>, vector<1x64x64xbf16>
    %71 = vector.shape_cast %70 : vector<1x64x64xbf16> to vector<64x64xbf16>
    %c0_25 = arith.constant 0 : index
    %c0_26 = arith.constant 0 : index
    %72 = vector.load %arg10[%c0_25, %c0_26] : memref<32x64xf32, #tpu.memory_space<vmem>>, vector<32x64xf32>
    %73 = arith.truncf %67 : vector<64x32xf32> to vector<64x32xbf16>
    %74 = arith.truncf %72 : vector<32x64xf32> to vector<32x64xbf16>
    %cst_27 = arith.constant dense<0.000000e+00> : vector<64x64xf32>
    %75 = tpu.matmul %73, %74, %cst_27 {dimension_numbers = #tpu.dot_dimension_numbers<[1], [0], [0], [1], [0, 0, 1, 1], [], []>} : vector<64x32xbf16>, vector<32x64xbf16>, vector<64x64xf32> -> vector<64x64xf32>
    %c0_28 = arith.constant 0 : index
    %c0_29 = arith.constant 0 : index
    %76 = vector.load %arg11[%c0_28, %c0_29] : memref<3x64xf32, #tpu.memory_space<vmem>>, vector<3x64xf32>
    %77 = vector.extract_strided_slice %69 {offsets = [0, 0], sizes = [64, 1], strides = [1, 1]} : vector<64x3xf32> to vector<64x1xf32>
    %78 = vector.extract_strided_slice %76 {offsets = [0, 0], sizes = [1, 64], strides = [1, 1]} : vector<3x64xf32> to vector<1x64xf32>
    %79 = vector.broadcast %77 : vector<64x1xf32> to vector<64x64xf32>
    %80 = vector.broadcast %78 : vector<1x64xf32> to vector<64x64xf32>
    %81 = arith.mulf %79, %80 : vector<64x64xf32>
    %82 = vector.extract_strided_slice %69 {offsets = [0, 1], sizes = [64, 1], strides = [1, 1]} : vector<64x3xf32> to vector<64x1xf32>
    %83 = vector.extract_strided_slice %76 {offsets = [1, 0], sizes = [1, 64], strides = [1, 1]} : vector<3x64xf32> to vector<1x64xf32>
    %84 = vector.broadcast %82 : vector<64x1xf32> to vector<64x64xf32>
    %85 = vector.broadcast %83 : vector<1x64xf32> to vector<64x64xf32>
    %86 = arith.mulf %84, %85 : vector<64x64xf32>
    %87 = arith.addf %81, %86 : vector<64x64xf32>
    %88 = vector.extract_strided_slice %69 {offsets = [0, 2], sizes = [64, 1], strides = [1, 1]} : vector<64x3xf32> to vector<64x1xf32>
    %89 = vector.extract_strided_slice %76 {offsets = [2, 0], sizes = [1, 64], strides = [1, 1]} : vector<3x64xf32> to vector<1x64xf32>
    %90 = vector.broadcast %88 : vector<64x1xf32> to vector<64x64xf32>
    %91 = vector.broadcast %89 : vector<1x64xf32> to vector<64x64xf32>
    %92 = arith.mulf %90, %91 : vector<64x64xf32>
    %93 = arith.addf %87, %92 : vector<64x64xf32>
    %94 = arith.addf %75, %93 : vector<64x64xf32>
    %c0_30 = arith.constant 0 : index
    %c0_31 = arith.constant 0 : index
    %95 = vector.load %arg12[%c0_30, %c0_31] : memref<1x64xf32, #tpu.memory_space<vmem>>, vector<1x64xf32>
    %96 = vector.broadcast %95 : vector<1x64xf32> to vector<64x64xf32>
    %97 = arith.addf %94, %96 : vector<64x64xf32>
    %98 = vector.extract_strided_slice %97 {offsets = [0, 0], sizes = [64, 32], strides = [1, 1]} : vector<64x64xf32> to vector<64x32xf32>
    %99 = vector.extract_strided_slice %97 {offsets = [0, 32], sizes = [64, 32], strides = [1, 1]} : vector<64x64xf32> to vector<64x32xf32>
    %100 = arith.truncf %99 : vector<64x32xf32> to vector<64x32xbf16>
    %cst_32 = arith.constant dense<0.000000e+00> : vector<64x32xf32>
    %101 = tpu.matmul %71, %100, %cst_32 {dimension_numbers = #tpu.dot_dimension_numbers<[1], [0], [0], [1], [0, 0, 1, 1], [], []>} : vector<64x64xbf16>, vector<64x32xbf16>, vector<64x32xf32> -> vector<64x32xf32>
    %102 = arith.addf %98, %101 : vector<64x32xf32>
    %cst_33 = arith.constant 0.000000e+00 : f32
    %103 = vector.broadcast %cst_33 : f32 to vector<64x32xf32>
    %104 = arith.maximumf %102, %103 : vector<64x32xf32>
    %c0_34 = arith.constant 0 : index
    %c0_35 = arith.constant 0 : index
    %105 = vector.load %arg13[%c0_34, %c0_35] : memref<32x64xf32, #tpu.memory_space<vmem>>, vector<32x64xf32>
    %106 = arith.truncf %104 : vector<64x32xf32> to vector<64x32xbf16>
    %107 = arith.truncf %105 : vector<32x64xf32> to vector<32x64xbf16>
    %cst_36 = arith.constant dense<0.000000e+00> : vector<64x64xf32>
    %108 = tpu.matmul %106, %107, %cst_36 {dimension_numbers = #tpu.dot_dimension_numbers<[1], [0], [0], [1], [0, 0, 1, 1], [], []>} : vector<64x32xbf16>, vector<32x64xbf16>, vector<64x64xf32> -> vector<64x64xf32>
    %c0_37 = arith.constant 0 : index
    %c0_38 = arith.constant 0 : index
    %109 = vector.load %arg14[%c0_37, %c0_38] : memref<3x64xf32, #tpu.memory_space<vmem>>, vector<3x64xf32>
    %110 = vector.extract_strided_slice %69 {offsets = [0, 0], sizes = [64, 1], strides = [1, 1]} : vector<64x3xf32> to vector<64x1xf32>
    %111 = vector.extract_strided_slice %109 {offsets = [0, 0], sizes = [1, 64], strides = [1, 1]} : vector<3x64xf32> to vector<1x64xf32>
    %112 = vector.broadcast %110 : vector<64x1xf32> to vector<64x64xf32>
    %113 = vector.broadcast %111 : vector<1x64xf32> to vector<64x64xf32>
    %114 = arith.mulf %112, %113 : vector<64x64xf32>
    %115 = vector.extract_strided_slice %69 {offsets = [0, 1], sizes = [64, 1], strides = [1, 1]} : vector<64x3xf32> to vector<64x1xf32>
    %116 = vector.extract_strided_slice %109 {offsets = [1, 0], sizes = [1, 64], strides = [1, 1]} : vector<3x64xf32> to vector<1x64xf32>
    %117 = vector.broadcast %115 : vector<64x1xf32> to vector<64x64xf32>
    %118 = vector.broadcast %116 : vector<1x64xf32> to vector<64x64xf32>
    %119 = arith.mulf %117, %118 : vector<64x64xf32>
    %120 = arith.addf %114, %119 : vector<64x64xf32>
    %121 = vector.extract_strided_slice %69 {offsets = [0, 2], sizes = [64, 1], strides = [1, 1]} : vector<64x3xf32> to vector<64x1xf32>
    %122 = vector.extract_strided_slice %109 {offsets = [2, 0], sizes = [1, 64], strides = [1, 1]} : vector<3x64xf32> to vector<1x64xf32>
    %123 = vector.broadcast %121 : vector<64x1xf32> to vector<64x64xf32>
    %124 = vector.broadcast %122 : vector<1x64xf32> to vector<64x64xf32>
    %125 = arith.mulf %123, %124 : vector<64x64xf32>
    %126 = arith.addf %120, %125 : vector<64x64xf32>
    %127 = arith.addf %108, %126 : vector<64x64xf32>
    %c0_39 = arith.constant 0 : index
    %c0_40 = arith.constant 0 : index
    %128 = vector.load %arg15[%c0_39, %c0_40] : memref<1x64xf32, #tpu.memory_space<vmem>>, vector<1x64xf32>
    %129 = vector.broadcast %128 : vector<1x64xf32> to vector<64x64xf32>
    %130 = arith.addf %127, %129 : vector<64x64xf32>
    %131 = vector.extract_strided_slice %130 {offsets = [0, 0], sizes = [64, 32], strides = [1, 1]} : vector<64x64xf32> to vector<64x32xf32>
    %132 = vector.extract_strided_slice %130 {offsets = [0, 32], sizes = [64, 32], strides = [1, 1]} : vector<64x64xf32> to vector<64x32xf32>
    %133 = arith.truncf %132 : vector<64x32xf32> to vector<64x32xbf16>
    %cst_41 = arith.constant dense<0.000000e+00> : vector<64x32xf32>
    %134 = tpu.matmul %71, %133, %cst_41 {dimension_numbers = #tpu.dot_dimension_numbers<[1], [0], [0], [1], [0, 0, 1, 1], [], []>} : vector<64x64xbf16>, vector<64x32xbf16>, vector<64x32xf32> -> vector<64x32xf32>
    %135 = arith.addf %131, %134 : vector<64x32xf32>
    %cst_42 = arith.constant 0.000000e+00 : f32
    %136 = vector.broadcast %cst_42 : f32 to vector<64x32xf32>
    %137 = arith.maximumf %135, %136 : vector<64x32xf32>
    %c0_43 = arith.constant 0 : index
    %c0_44 = arith.constant 0 : index
    %138 = vector.load %arg16[%c0_43, %c0_44] : memref<32x3xf32, #tpu.memory_space<vmem>>, vector<32x3xf32>
    %139 = arith.truncf %137 : vector<64x32xf32> to vector<64x32xbf16>
    %140 = arith.truncf %138 : vector<32x3xf32> to vector<32x3xbf16>
    %cst_45 = arith.constant dense<0.000000e+00> : vector<64x3xf32>
    %141 = tpu.matmul %139, %140, %cst_45 {dimension_numbers = #tpu.dot_dimension_numbers<[1], [0], [0], [1], [0, 0, 1, 1], [], []>} : vector<64x32xbf16>, vector<32x3xbf16>, vector<64x3xf32> -> vector<64x3xf32>
    %c0_46 = arith.constant 0 : index
    %c0_47 = arith.constant 0 : index
    %142 = vector.load %arg17[%c0_46, %c0_47] : memref<3x3xf32, #tpu.memory_space<vmem>>, vector<3x3xf32>
    %143 = vector.extract_strided_slice %69 {offsets = [0, 0], sizes = [64, 1], strides = [1, 1]} : vector<64x3xf32> to vector<64x1xf32>
    %144 = vector.extract_strided_slice %142 {offsets = [0, 0], sizes = [1, 3], strides = [1, 1]} : vector<3x3xf32> to vector<1x3xf32>
    %145 = vector.broadcast %143 : vector<64x1xf32> to vector<64x3xf32>
    %146 = vector.broadcast %144 : vector<1x3xf32> to vector<64x3xf32>
    %147 = arith.mulf %145, %146 : vector<64x3xf32>
    %148 = vector.extract_strided_slice %69 {offsets = [0, 1], sizes = [64, 1], strides = [1, 1]} : vector<64x3xf32> to vector<64x1xf32>
    %149 = vector.extract_strided_slice %142 {offsets = [1, 0], sizes = [1, 3], strides = [1, 1]} : vector<3x3xf32> to vector<1x3xf32>
    %150 = vector.broadcast %148 : vector<64x1xf32> to vector<64x3xf32>
    %151 = vector.broadcast %149 : vector<1x3xf32> to vector<64x3xf32>
    %152 = arith.mulf %150, %151 : vector<64x3xf32>
    %153 = arith.addf %147, %152 : vector<64x3xf32>
    %154 = vector.extract_strided_slice %69 {offsets = [0, 2], sizes = [64, 1], strides = [1, 1]} : vector<64x3xf32> to vector<64x1xf32>
    %155 = vector.extract_strided_slice %142 {offsets = [2, 0], sizes = [1, 3], strides = [1, 1]} : vector<3x3xf32> to vector<1x3xf32>
    %156 = vector.broadcast %154 : vector<64x1xf32> to vector<64x3xf32>
    %157 = vector.broadcast %155 : vector<1x3xf32> to vector<64x3xf32>
    %158 = arith.mulf %156, %157 : vector<64x3xf32>
    %159 = arith.addf %153, %158 : vector<64x3xf32>
    %160 = arith.addf %141, %159 : vector<64x3xf32>
    %c0_48 = arith.constant 0 : index
    %c0_49 = arith.constant 0 : index
    %161 = vector.load %arg18[%c0_48, %c0_49] : memref<1x3xf32, #tpu.memory_space<vmem>>, vector<1x3xf32>
    %162 = vector.broadcast %161 : vector<1x3xf32> to vector<64x3xf32>
    %163 = arith.addf %160, %162 : vector<64x3xf32>
    %164 = math.tanh %163 : vector<64x3xf32>
    %c0_50 = arith.constant 0 : index
    %c0_51 = arith.constant 0 : index
    %c0_52 = arith.constant 0 : index
    %165 = vector.load %arg19[%c0_50, %c0_51, %c0_52] : memref<1x64x3xf32, #tpu.memory_space<vmem>>, vector<1x64x3xf32>
    %166 = vector.shape_cast %165 : vector<1x64x3xf32> to vector<64x3xf32>
    %167 = vector.shape_cast %164 : vector<64x3xf32> to vector<1x64x3xf32>
    tpu.vector_store %arg19[%c0_50, %c0_51, %c0_52], %167 {strides = array<i32>} : memref<1x64x3xf32, #tpu.memory_space<vmem>>, vector<1x64x3xf32>,
    %c0_53 = arith.constant 0 : index
    %c0_54 = arith.constant 0 : index
    %c0_55 = arith.constant 0 : index
    %168 = vector.load %arg20[%c0_53, %c0_54, %c0_55] : memref<1x64x32xf32, #tpu.memory_space<vmem>>, vector<1x64x32xf32>
    %169 = vector.shape_cast %168 : vector<1x64x32xf32> to vector<64x32xf32>
    %170 = vector.shape_cast %137 : vector<64x32xf32> to vector<1x64x32xf32>
    tpu.vector_store %arg20[%c0_53, %c0_54, %c0_55], %170 {strides = array<i32>} : memref<1x64x32xf32, #tpu.memory_space<vmem>>, vector<1x64x32xf32>,
    return
  }
  func.func @transform_0(%arg0: i32) -> (i32, i32, i32) {
    %c0_i32 = arith.constant 0 : i32
    %c0_i32_0 = arith.constant 0 : i32
    %c0_i32_1 = arith.constant 0 : i32
    return %arg0, %c0_i32, %c0_i32_0 : i32, i32, i32
  }
  func.func @transform_1(%arg0: i32) -> (i32, i32, i32) {
    %c0_i32 = arith.constant 0 : i32
    %c0_i32_0 = arith.constant 0 : i32
    %c0_i32_1 = arith.constant 0 : i32
    return %arg0, %c0_i32, %c0_i32_0 : i32, i32, i32
  }
  func.func @transform_2(%arg0: i32) -> (i32, i32) {
    %c0_i32 = arith.constant 0 : i32
    %c0_i32_0 = arith.constant 0 : i32
    %c0_i32_1 = arith.constant 0 : i32
    return %c0_i32, %c0_i32_0 : i32, i32
  }
  func.func @transform_3(%arg0: i32) -> (i32, i32, i32) {
    %c0_i32 = arith.constant 0 : i32
    %c0_i32_0 = arith.constant 0 : i32
    %c0_i32_1 = arith.constant 0 : i32
    return %arg0, %c0_i32, %c0_i32_0 : i32, i32, i32
  }
  func.func @transform_4(%arg0: i32) -> (i32, i32, i32) {
    %c0_i32 = arith.constant 0 : i32
    %c0_i32_0 = arith.constant 0 : i32
    %c0_i32_1 = arith.constant 0 : i32
    return %arg0, %c0_i32, %c0_i32_0 : i32, i32, i32
  }
  func.func @transform_5(%arg0: i32) -> (i32, i32) {
    %c0_i32 = arith.constant 0 : i32
    %c0_i32_0 = arith.constant 0 : i32
    %c0_i32_1 = arith.constant 0 : i32
    return %c0_i32, %c0_i32_0 : i32, i32
  }
  func.func @transform_6(%arg0: i32) -> (i32, i32) {
    %c0_i32 = arith.constant 0 : i32
    %c0_i32_0 = arith.constant 0 : i32
    %c0_i32_1 = arith.constant 0 : i32
    return %c0_i32, %c0_i32_0 : i32, i32
  }
  func.func @transform_7(%arg0: i32) -> (i32, i32, i32) {
    %c0_i32 = arith.constant 0 : i32
    %c0_i32_0 = arith.constant 0 : i32
    %c0_i32_1 = arith.constant 0 : i32
    return %arg0, %c0_i32, %c0_i32_0 : i32, i32, i32
  }
  func.func @transform_8(%arg0: i32) -> (i32, i32, i32) {
    %c0_i32 = arith.constant 0 : i32
    %c0_i32_0 = arith.constant 0 : i32
    %c0_i32_1 = arith.constant 0 : i32
    return %arg0, %c0_i32, %c0_i32_0 : i32, i32, i32
  }
  func.func @transform_9(%arg0: i32) -> (i32, i32) {
    %c0_i32 = arith.constant 0 : i32
    %c0_i32_0 = arith.constant 0 : i32
    %c0_i32_1 = arith.constant 0 : i32
    return %c0_i32, %c0_i32_0 : i32, i32
  }
  func.func @transform_10(%arg0: i32) -> (i32, i32) {
    %c0_i32 = arith.constant 0 : i32
    %c0_i32_0 = arith.constant 0 : i32
    %c0_i32_1 = arith.constant 0 : i32
    return %c0_i32, %c0_i32_0 : i32, i32
  }
  func.func @transform_11(%arg0: i32) -> (i32, i32) {
    %c0_i32 = arith.constant 0 : i32
    %c0_i32_0 = arith.constant 0 : i32
    %c0_i32_1 = arith.constant 0 : i32
    return %c0_i32, %c0_i32_0 : i32, i32
  }
  func.func @transform_12(%arg0: i32) -> (i32, i32) {
    %c0_i32 = arith.constant 0 : i32
    %c0_i32_0 = arith.constant 0 : i32
    %c0_i32_1 = arith.constant 0 : i32
    return %c0_i32, %c0_i32_0 : i32, i32
  }
  func.func @transform_13(%arg0: i32) -> (i32, i32) {
    %c0_i32 = arith.constant 0 : i32
    %c0_i32_0 = arith.constant 0 : i32
    %c0_i32_1 = arith.constant 0 : i32
    return %c0_i32, %c0_i32_0 : i32, i32
  }
  func.func @transform_14(%arg0: i32) -> (i32, i32) {
    %c0_i32 = arith.constant 0 : i32
    %c0_i32_0 = arith.constant 0 : i32
    %c0_i32_1 = arith.constant 0 : i32
    return %c0_i32, %c0_i32_0 : i32, i32
  }
  func.func @transform_15(%arg0: i32) -> (i32, i32) {
    %c0_i32 = arith.constant 0 : i32
    %c0_i32_0 = arith.constant 0 : i32
    %c0_i32_1 = arith.constant 0 : i32
    return %c0_i32, %c0_i32_0 : i32, i32
  }
  func.func @transform_16(%arg0: i32) -> (i32, i32) {
    %c0_i32 = arith.constant 0 : i32
    %c0_i32_0 = arith.constant 0 : i32
    %c0_i32_1 = arith.constant 0 : i32
    return %c0_i32, %c0_i32_0 : i32, i32
  }
  func.func @transform_17(%arg0: i32) -> (i32, i32) {
    %c0_i32 = arith.constant 0 : i32
    %c0_i32_0 = arith.constant 0 : i32
    %c0_i32_1 = arith.constant 0 : i32
    return %c0_i32, %c0_i32_0 : i32, i32
  }
  func.func @transform_18(%arg0: i32) -> (i32, i32, i32) {
    %c0_i32 = arith.constant 0 : i32
    %c0_i32_0 = arith.constant 0 : i32
    %c0_i32_1 = arith.constant 0 : i32
    return %arg0, %c0_i32, %c0_i32_0 : i32, i32, i32
  }
  func.func @transform_19(%arg0: i32) -> (i32, i32, i32) {
    %c0_i32 = arith.constant 0 : i32
    %c0_i32_0 = arith.constant 0 : i32
    %c0_i32_1 = arith.constant 0 : i32
    return %arg0, %c0_i32, %c0_i32_0 : i32, i32, i32
  }
}

</mosaic_0001>

<bundles_post_ra>
// kernel: tpu_custom_call.1
= control target key start
LH: loop header
LB: loop body
LE: loop exit
PB: predicated region body
PF: predicated region fallthrough
CT: control target
= control target key end

     0   :  { %s3666_s0 = inlined_call_operand.vmem [shape: f32[2,64,256], index: 0, kind: input, shape index: {}]   ;;  %s3667_s1 = inlined_call_operand.vmem [shape: f32[2,256,4], index: 1, kind: input, shape index: {}]   ;;  %s3668_s2 = inlined_call_operand.vmem [shape: f32[4,32], index: 2, kind: input, shape index: {}]   ;;  %s3669_s3 = inlined_call_operand.vmem [shape: f32[2,64,64], index: 3, kind: input, shape index: {}]   ;;  %s3670_s4 = inlined_call_operand.vmem [shape: f32[2,64,4], index: 4, kind: input, shape index: {}]   ;;  %s3671_s5 = inlined_call_operand.vmem [shape: f32[4,32], index: 5, kind: input, shape index: {}]   ;;  %s3672_s6 = inlined_call_operand.vmem [shape: f32[1,32], index: 6, kind: input, shape index: {}]   ;;  %s3673_s7 = inlined_call_operand.vmem [shape: f32[2,64,3], index: 7, kind: input, shape index: {}]   ;;  %s3674_s8 = inlined_call_operand.vmem [shape: bf16[2,64,64], index: 8, kind: input, shape index: {}]   ;;  %s3675_s9 = inlined_call_operand.vmem [shape: f32[32,64], index: 9, kind: input, shape index: {}]   ;;  %s3676_s10 = inlined_call_operand.vmem [shape: f32[3,64], index: 10, kind: input, shape index: {}]   ;;  %s3677_s11 = inlined_call_operand.vmem [shape: f32[1,64], index: 11, kind: input, shape index: {}]   ;;  %s3678_s12 = inlined_call_operand.vmem [shape: f32[32,64], index: 12, kind: input, shape index: {}]   ;;  %s3679_s13 = inlined_call_operand.vmem [shape: f32[3,64], index: 13, kind: input, shape index: {}]   ;;  %s3680_s14 = inlined_call_operand.vmem [shape: f32[1,64], index: 14, kind: input, shape index: {}]   ;;  %s3681_s15 = inlined_call_operand.vmem [shape: f32[32,3], index: 15, kind: input, shape index: {}]   ;;  %s3682_s16 = inlined_call_operand.vmem [shape: f32[3,3], index: 16, kind: input, shape index: {}]   ;;  %s3683_s17 = inlined_call_operand.vmem [shape: f32[1,3], index: 17, kind: input, shape index: {}]   ;;  %s3684_s18 = inlined_call_operand.vmem [shape: f32[2,64,3], index: 18, kind: output, shape index: {0}]   ;;  %s3685_s19 = inlined_call_operand.vmem [shape: f32[2,64,32], index: 19, kind: output, shape index: {1}]  }
   0x1   :  { %3686 = sst [smem:[#allocation2_spill]] %s3666_s0  ;;  %s2851_s0 = smov 0  }
   0x2   :  { %3687 = sst [smem:[#allocation3_spill]] %s3667_s1 }
   0x3   :  { %3688 = sst [smem:[#allocation4_spill]] %s3668_s2 }
   0x4   :  { %3689 = sst [smem:[#allocation5_spill]] %s3669_s3 }
   0x5 LB: > { %s2398_s30 = sadd.s32 4294967295, %s2744_s0   ;;  %p2402_p0 = scmp.ge.s32.totalorder %s2744_s0, 1  ;;  %s2744_s0 = sphi %s2851_s0, %s30_s0  }
   0x6   : > { %p590_p1 = scmp.lt.s32.totalorder %s2744_s0, 3 }
   0x8   : > { %p591_p2 = pnand %p2402_p0, %p590_p1 }
   0x9   : > { %p676_p3 = scmp.lt.s32.totalorder (!%p591_p2), %s2398_s30, 1  ;;  %s3690_s22 = sld [smem:[#allocation3_spill]] (!%p591_p2) }
   0xa   : > { %594 = sbr.rel (%p591_p2) target bundleno = 1874 (0x752), region = 92  ;;  %s3691_s28 = sld [smem:[#allocation5_spill]] (!%p591_p2) }
   0xb   : > { %s3693_s26 = sld [smem:[#allocation4_spill]] (!%p591_p2) }
   0xf   : > { %v2746_v0 = vmov 1   ;;  %v2747_v1 = vmov 0   ;;  %s3695_s30 = smov (!%p676_p3, %s2398_s30), 1  ;;  %vm1102_vm0 = vcmask 523264   ;;  %vm1588_vm1 = vcmask 261120  }
  0x10   : > { %2645 = vset.pattern.permute.xlu0 %v2746_v0  ;;  %2644 = vset.pattern.permute.xlu1 %v2747_v1  ;;  %s2454_s20 = sshll.u32 %s3695_s30, 8  ;;  %s2870_s23 = sshll.u32 %s3695_s30, 6  ;;  %vm2233_vm2 = vcmask 23552  }
  0x11   : > { %s2867_s2 = scalar_lea.vmem %s3690_s22, %s2454_s20  ;;  %s2879_s3 = scalar_lea.vmem %s3670_s4, %s2870_s23 }
  0x12   : > { %v764_v2 = vld [vmem:[%s2867_s2 + $0xf0] sm:$0xff]  ;;  %v765_v3 = vld [vmem:[%s2867_s2 + $0xf8] sm:$0xff]  ;;  %v762_v7 = vld [vmem:[%s2867_s2 + $0xe0] sm:$0xff]  ;;  %s2891_s29 = scalar_lea.vmem %s3691_s28, %s2870_s23  ;;  %s2453_s20 = sshll.u32 %s3695_s30, 7 }
  0x13   : > { %v748_v4 = vld [vmem:[%s2867_s2 + $0x70] sm:$0xff]  ;;  %v789_v5 = vpack.c.bf16 %v765_v3, %v764_v2  ;;  %v749_v6 = vld [vmem:[%s2867_s2 + $0x78] sm:$0xff]  ;;  %v763_v8 = vld [vmem:[%s2867_s2 + $0xe8] sm:$0xff]  ;;  %s3692_s22 = sld [smem:[#allocation2_spill]]  ;;  %s3610_s25 = scalar_lea.vmem %s3685_s19, %s2870_s23 }
  0x14   : > { %v1092_v9 = vld [vmem:[%s2879_s3 + $0x30] sm:$0xff]  ;;  %v1093_v10 = vld [vmem:[%s2879_s3 + $0x38] sm:$0xff]  ;;  %v1090_v11 = vld [vmem:[%s2879_s3 + $0x20] sm:$0xff]  ;;  %v781_v12 = vpack.c.bf16 %v749_v6, %v748_v4  ;;  %v788_v13 = vpack.c.bf16 %v763_v8, %v762_v7 }
  0x15   : > { %v1101_v14 = vpack.c.bf16 %v1093_v10, %v1092_v9  ;;  %v1091_v15 = vld [vmem:[%s2879_s3 + $0x28] sm:$0xff]  ;;  %2461 = vmatprep.subr.bf16.mxu0 %v789_v5  ;;  %v1088_v17 = vld [vmem:[%s2879_s3 + $0x10] sm:$0xff]  ;;  %v1089_v18 = vld [vmem:[%s2879_s3 + $0x18] sm:$0xff] }
  0x16   : > { %v1100_v16 = vpack.c.bf16 %v1091_v15, %v1090_v11  ;;  %v1078_v19 = vld [vmem:[%s2891_s29] sm:$0xff]  ;;  %2462 = vmatpush3.bf16.msra.mxu0 %v781_v12  ;;  %v1079_v20 = vld [vmem:[%s2891_s29 + $0x8] sm:$0xff]  ;;  %v760_v24 = vld [vmem:[%s2867_s2 + $0xd0] sm:$0xff]  ;;  %v1099_v25 = vpack.c.bf16 %v1089_v18, %v1088_v17 }
  0x17   : > { %2543 = vmatprep.subr.bf16.mxu1 %v1101_v14  ;;  %2463 = vmatprep.subr.bf16.mxu0 %v788_v13  ;;  %v1094_v21 = vpack.c.bf16 %v1079_v20, %v1078_v19  ;;  %v746_v22 = vld [vmem:[%s2867_s2 + $0x60] sm:$0xff]  ;;  %v747_v23 = vld [vmem:[%s2867_s2 + $0x68] sm:$0xff]  ;;  %v761_v27 = vld [vmem:[%s2867_s2 + $0xd8] sm:$0xff] }
  0x18   : > { %2544 = vmatpush3.bf16.msra.mxu1 %v1101_v14  ;;  %v780_v26 = vpack.c.bf16 %v747_v23, %v746_v22  ;;  %v744_v28 = vld [vmem:[%s2867_s2 + $0x50] sm:$0xff]  ;;  %v745_v29 = vld [vmem:[%s2867_s2 + $0x58] sm:$0xff]  ;;  %v1086_v30 = vld [vmem:[%s2879_s3] sm:$0xff]  ;;  %v787_v32 = vpack.c.bf16 %v761_v27, %v760_v24 }
  0x19   : > { %2545 = vmatprep.subr.bf16.mxu1 %v1100_v16  ;;  %v1087_v31 = vld [vmem:[%s2879_s3 + $0x8] sm:$0xff]  ;;  %2551 = vmatprep.mubr.msk.bf16.mxu1 %vm1102_vm0, %v1094_v21  ;;  %v758_v33 = vld [vmem:[%s2867_s2 + $0xc0] sm:$0xff]  ;;  %v779_v34 = vpack.c.bf16 %v745_v29, %v744_v28  ;;  %v756_v40 = vld [vmem:[%s2867_s2 + $0xb0] sm:$0xff]  ;;  %s2917_s24 = scalar_lea.vmem %s3692_s22, %s2453_s20  ;;  %s3075_s22 = scalar_lea.vmem %s3673_s7, %s2870_s23 }
  0x1a   : > { %2464 = vmatpush3.bf16.msra.mxu0 %v780_v26  ;;  %v759_v35 = vld [vmem:[%s2867_s2 + $0xc8] sm:$0xff]  ;;  %v742_v37 = vld [vmem:[%s2867_s2 + $0x40] sm:$0xff]  ;;  %v1098_v39 = vpack.c.bf16 %v1087_v31, %v1086_v30  ;;  %v757_v41 = vld [vmem:[%s2867_s2 + $0xb8] sm:$0xff]  ;;  %s2458_s3 = sshll.u32 %s3695_s30, 5 }
  0x1b   : > { %2465 = vmatprep.subr.bf16.mxu0 %v787_v32  ;;  %v786_v36 = vpack.c.bf16 %v759_v35, %v758_v33  ;;  %v743_v38 = vld [vmem:[%s2867_s2 + $0x48] sm:$0xff]  ;;  %v1080_v42 = vld [vmem:[%s2891_s29 + $0x10] sm:$0xff]  ;;  %v1081_v43 = vld [vmem:[%s2891_s29 + $0x18] sm:$0xff]  ;;  %v785_v46 = vpack.c.bf16 %v757_v41, %v756_v40  ;;  %s3511_s28 = scalar_lea.vmem %s3674_s8, %s2458_s3 }
  0x1c   : > { %2546 = vmatpush3.bf16.msra.mxu1 %v1100_v16  ;;  %v778_v44 = vpack.c.bf16 %v743_v38, %v742_v37  ;;  %v1082_v45 = vld [vmem:[%s2891_s29 + $0x20] sm:$0xff]  ;;  %v740_v47 = vld [vmem:[%s2867_s2 + $0x30] sm:$0xff]  ;;  %v741_v48 = vld [vmem:[%s2867_s2 + $0x38] sm:$0xff]  ;;  %v1095_v54 = vpack.c.bf16 %v1081_v43, %v1080_v42  ;;  %v2748_v37 = vmov 2   ;;  %v2749_v38 = vmov 3  }
  0x1d   : > { %2547 = vmatprep.subr.bf16.mxu1 %v1099_v25  ;;  %v1083_v49 = vld [vmem:[%s2891_s29 + $0x28] sm:$0xff]  ;;  %v754_v50 = vld [vmem:[%s2867_s2 + $0xa0] sm:$0xff]  ;;  %v721_v53 = vld [vmem:[%s2917_s24 + $0x18] sm:$0xff]  ;;  %v777_v55 = vpack.c.bf16 %v741_v48, %v740_v47 }
  0x1e   : > { %2466 = vmatpush3.bf16.msra.mxu0 %v779_v34  ;;  %v755_v51 = vld [vmem:[%s2867_s2 + $0xa8] sm:$0xff]  ;;  %v1096_v57 = vpack.c.bf16 %v1083_v49, %v1082_v45  ;;  %v738_v59 = vld [vmem:[%s2867_s2 + $0x20] sm:$0xff]  ;;  %v752_v61 = vld [vmem:[%s2867_s2 + $0x90] sm:$0xff] }
  0x1f   : > { %2467 = vmatprep.subr.bf16.mxu0 %v786_v36  ;;  %v719_v52 = vld [vmem:[%s2917_s24 + $0x8] sm:$0xff]  ;;  %v784_v58 = vpack.c.bf16 %v755_v51, %v754_v50  ;;  %v753_v62 = vld [vmem:[%s2867_s2 + $0x98] sm:$0xff]  ;;  %v1084_v63 = vld [vmem:[%s2891_s29 + $0x30] sm:$0xff] }
  0x20   : > { %2548 = vmatpush3.bf16.msra.mxu1 %v1099_v25  ;;  %v767_v56 = vpack.c.bf16 %v721_v53, %v719_v52  ;;  %v739_v60 = vld [vmem:[%s2867_s2 + $0x28] sm:$0xff]  ;;  %v1085_v3 = vld [vmem:[%s2891_s29 + $0x38] sm:$0xff]  ;;  %v783_v4 = vpack.c.bf16 %v753_v62, %v752_v61  ;;  %v736_v5 = vld [vmem:[%s2867_s2 + $0x10] sm:$0xff]  ;;  %s2750_s29 = smov 96  }
  0x21   : > { %2549 = vmatprep.subr.bf16.mxu1 %v1098_v39  ;;  %v776_v2 = vpack.c.bf16 %v739_v60, %v738_v59  ;;  %v737_v6 = vld [vmem:[%s2867_s2 + $0x18] sm:$0xff]  ;;  %v750_v7 = vld [vmem:[%s2867_s2 + $0x80] sm:$0xff]  ;;  %v751_v8 = vld [vmem:[%s2867_s2 + $0x88] sm:$0xff]  ;;  %v1097_v9 = vpack.c.bf16 %v1085_v3, %v1084_v63 }
  0x22   : > { %2468 = vmatpush3.bf16.msra.mxu0 %v778_v44  ;;  %822 = vmatprep.mubr.bf16.mxu0 %v767_v56  ;;  %v775_v10 = vpack.c.bf16 %v737_v6, %v736_v5  ;;  %v782_v11 = vpack.c.bf16 %v751_v8, %v750_v7  ;;  %v734_v12 = vld [vmem:[%s2867_s2] sm:$0xff]  ;;  %v735_v13 = vld [vmem:[%s2867_s2 + $0x8] sm:$0xff]  ;;  %v720_v16 = vld [vmem:[%s2917_s24 + $0x10] sm:$0xff] }
  0x23   : > { %2469 = vmatprep.subr.bf16.mxu0 %v785_v46  ;;  %v774_v14 = vpack.c.bf16 %v735_v13, %v734_v12  ;;  %v718_v15 = vld [vmem:[%s2917_s24] sm:$0xff]  ;;  %v723_v17 = vld [vmem:[%s2917_s24 + $0x28] sm:$0xff]  ;;  %v725_v18 = vld [vmem:[%s2917_s24 + $0x38] sm:$0xff] }
  0x24   : > { %2550 = vmatpush3.bf16.msra.mxu1 %v1098_v39  ;;  %v766_v19 = vpack.c.bf16 %v720_v16, %v718_v15  ;;  %v769_v20 = vpack.c.bf16 %v725_v18, %v723_v17  ;;  %v722_v21 = vld [vmem:[%s2917_s24 + $0x20] sm:$0xff]  ;;  %v724_v22 = vld [vmem:[%s2917_s24 + $0x30] sm:$0xff]  ;;  %v727_v23 = vld [vmem:[%s2917_s24 + $0x48] sm:$0xff] }
  0x25   : > { %v729_v24 = vld [vmem:[%s2917_s24 + $0x58] sm:$0xff]  ;;  %v768_v25 = vpack.c.bf16 %v724_v22, %v722_v21  ;;  %v726_v27 = vld [vmem:[%s2917_s24 + $0x40] sm:$0xff]  ;;  %v728_v28 = vld [vmem:[%s2917_s24 + $0x50] sm:$0xff] }
  0x26   : > { %2470 = vmatpush3.bf16.msra.mxu0 %v777_v55  ;;  %v771_v26 = vpack.c.bf16 %v729_v24, %v727_v23  ;;  %v731_v29 = vld [vmem:[%s2917_s24 + $0x68] sm:$0xff]  ;;  %v733_v30 = vld [vmem:[%s2917_s24 + $0x78] sm:$0xff]  ;;  %v770_v31 = vpack.c.bf16 %v728_v28, %v726_v27  ;;  %v730_v33 = vld [vmem:[%s2917_s24 + $0x60] sm:$0xff] }
  0x27   : > { %2552 = vmatmul.mubr.msk.bf16.vlgmr.msra.gmra.mxu1 %vm1102_vm0, %v1095_v54  ;;  %2471 = vmatprep.subr.bf16.mxu0 %v784_v58  ;;  %v773_v32 = vpack.c.bf16 %v733_v30, %v731_v29  ;;  %v732_v34 = vld [vmem:[%s2917_s24 + $0x70] sm:$0xff]  ;;  %v1421_v12 = vld [vmem:[%s3675_s9] sm:$0xff]  ;;  %v1422_v13 = vld [vmem:[%s3675_s9 + $0x8] sm:$0xff]  ;;  %v896_v29 = vlaneseq }
  0x28   : > { %2555 = vmatprep.mubr.msk.bf16.mxu1 %vm1102_vm0, %v1096_v57  ;;  %v772_v35 = vpack.c.bf16 %v732_v34, %v730_v33  ;;  %v1423_v8 = vld [vmem:[%s3675_s9 + $0x10] sm:$0xff]  ;;  %v3078_v18 = vld [vmem:[%s3075_s22 + $0x38] sm:$0xff]  ;;  %v3100_v30 = vld [vmem:[%s3075_s22 + $0x28] sm:$0xff] }
  0x2a   : > { %2472 = vmatpush3.bf16.msra.mxu0 %v776_v2 }
  0x2b   : > { %2473 = vmatprep.subr.bf16.mxu0 %v783_v4 }
  0x2e   : > { %2474 = vmatpush3.bf16.msra.mxu0 %v775_v10 }
  0x2f   : > { %2556 = vmatmul.mubr.msk.bf16.gmra.mxu1 %vm1102_vm0, %v1097_v9  ;;  %2475 = vmatprep.subr.bf16.mxu0 %v782_v11  ;;  %v1424_v9 = vld [vmem:[%s3675_s9 + $0x18] sm:$0xff] }
  0x30   : > { %v1430_v11 = vpack.c.bf16 %v1424_v9, %v1423_v8  ;;  %v1409_v8 = vld [vmem:[%s3075_s22 + $0x20] sm:$0xff] }
  0x32   : > { %2476 = vmatpush3.bf16.msra.mxu0 %v774_v14  ;;  %2559 = vmatprep.subr.bf16.mxu1 %v1430_v11  ;;  %v1429_v14 = vpack.c.bf16 %v1422_v13, %v1421_v12 }
  0x33   : > { %2560 = vmatpush3.bf16.msra.mxu1 %v1430_v11 }
  0x34   : > { %2561 = vmatprep.subr.bf16.mxu1 %v1429_v14 }
  0x35   : > { %823 = vmatmul.mubr.bf16.vlgmr.msra.gmra.mxu0 %v766_v19 }
  0x36   : > { %830 = vmatprep.mubr.bf16.mxu0 %v769_v20 }
  0x37   : > { %2562 = vmatpush3.bf16.msra.mxu1 %v1429_v14 }
  0x3d   : > { %831 = vmatmul.mubr.bf16.gmra.mxu0 %v768_v25 }
  0x3e   : > { %838 = vmatprep.mubr.bf16.mxu0 %v771_v26 }
  0x45   : > { %839 = vmatmul.mubr.bf16.gmra.mxu0 %v770_v31 }
  0x46   : > { %846 = vmatprep.mubr.bf16.mxu0 %v773_v32  ;;  %v3105_v32 = vshrl.u32 %v896_v29, 7 }
  0x48   : > { %v3111_v34 = vsub.s32 1, %v3105_v32 }
  0x4d   : > { %847 = vmatmul.mubr.bf16.gmra.mxu0 %v772_v35  ;;  %v3114_v35 = vsub.s32 0, %v3105_v32 }
  0xe7   : > { %v2553_v36 = vpop.f32.mrf.mxu1 }
  0xe8   : > { %1242 = vperm.xlu0 %2645, %v2553_v36   ;;  %1193 = vperm.xlu1 %2644, %v2553_v36  }
  0xe9   : > { %v1149_v39 = vpop.f32.mrf.mxu1 }
  0xeb   : > { %v2554_v40 = vpop.f32.mrf.mxu1 }
  0xec   : > { %2646 = vset.pattern.permute.xlu0 %v2748_v37  ;;  %2647 = vset.pattern.permute.xlu1 %v2749_v38 }
  0xed   : > { %1294 = vperm.xlu0 %2646, %v2553_v36   ;;  %1346 = vperm.xlu1 %2647, %v2553_v36   ;;  %v1152_v41 = vpop.f32.mrf.mxu1 }
  0xef   : > { %v2964_v42 = vpop.f32.mrf.mxu1 }
  0xf1   : > { %2649 = vset.pattern.permute.xlu0 %v2746_v0  ;;  %2648 = vset.pattern.permute.xlu1 %v2747_v1  ;;  %v2969_v43 = vpop.f32.mrf.mxu1 }
  0xf2   : > { %1234 = vperm.xlu0 %2649, %v1149_v39   ;;  %1183 = vperm.xlu1 %2648, %v1149_v39  }
  0xf3   : > { %v2974_v44 = vpop.f32.mrf.mxu1 }
  0xf5   : > { %v2477_v45 = vpop.f32.mrf.mxu0  ;;  %v2979_v46 = vpop.f32.mrf.mxu1 }
  0xf6   : > { %2659 = vset.pattern.permute.xlu0 %v2749_v38  ;;  %2650 = vset.pattern.permute.xlu1 %v2748_v37 }
  0xf7   : > { %1286 = vperm.xlu1 %2650, %v1149_v39   ;;  %1342 = vperm.xlu0 %2659, %v1152_v41   ;;  %v2478_v47 = vpop.f32.mrf.mxu0 }
  0xf8   : > { %v2986_v49 = vadd.f32 %v2478_v47, %v2477_v45 }
  0xf9   : > { %v2480_v48 = vpop.f32.mrf.mxu0 }
  0xfb   : > { %2651 = vset.pattern.permute.xlu1 %v2749_v38  ;;  %2662 = vset.pattern.permute.xlu0 %v2748_v37  ;;  %v2481_v50 = vpop.f32.mrf.mxu0 }
  0xfc   : > { %1338 = vperm.xlu1 %2651, %v1149_v39   ;;  %1310 = vperm.xlu0 %2662, %v2964_v42   ;;  %v2991_v51 = vadd.f32 %v2481_v50, %v2480_v48 }
  0xfd   : > { %v2483_v52 = vpop.f32.mrf.mxu0 }
  0xff   : > { %v2484_v53 = vpop.f32.mrf.mxu0 }
 0x100   : > { %2652 = vset.pattern.permute.xlu1 %v2747_v1  ;;  %2666 = vset.pattern.permute.xlu0 %v2749_v38  ;;  %v2485_v54 = vadd.f32 %v2484_v53, %v2483_v52 }
 0x101   : > { %1198 = vperm.xlu1 %2652, %v2554_v40   ;;  %1354 = vperm.xlu0 %2666, %v2969_v43   ;;  %v2486_v55 = vpop.f32.mrf.mxu0 }
 0x103   : > { %v2487_v56 = vpop.f32.mrf.mxu0 }
 0x104   : > { %v2488_v58 = vadd.f32 %v2487_v56, %v2486_v55  ;;  %v1411_v56 = vld [vmem:[%s3075_s22 + $0x30] sm:$0xff] }
 0x105   : > { %2653 = vset.pattern.permute.xlu1 %v2746_v0  ;;  %2667 = vset.pattern.permute.xlu0 %v2747_v1  ;;  %v2489_v57 = vpop.f32.mrf.mxu0 }
 0x106   : > { %1246 = vperm.xlu1 %2653, %v2554_v40   ;;  %1218 = vperm.xlu0 %2667, %v2974_v44  }
 0x107   : > { %v2490_v59 = vpop.f32.mrf.mxu0 }
 0x108   : > { %v2491_v60 = vadd.f32 %v2490_v59, %v2489_v57  ;;  %v3145_v57 = vld [vmem:[%s3075_s22 + $0x8] sm:$0xff] }
 0x109   : > { %v2492_v61 = vpop.f32.mrf.mxu0 }
 0x10a   : > { %2654 = vset.pattern.permute.xlu1 %v2748_v37  ;;  %1208 = vperm.xlu0 %2667, %v2979_v46  }
 0x10b   : > { %1298 = vperm.xlu1 %2654, %v2554_v40   ;;  %v2493_v62 = vpop.f32.mrf.mxu0 }
 0x10c   : > { %v2494_v2 = vadd.f32 %v2493_v62, %v2492_v61 }
 0x10d   : > { %v2495_v63 = vpop.f32.mrf.mxu0 }
 0x10e   : > { %2671 = vset.pattern.permute.xlu0 %v2748_v37 }
 0x10f   : > { %2655 = vset.pattern.permute.xlu1 %v2749_v38  ;;  %1306 = vperm.xlu0 %2671, %v2979_v46   ;;  %v2496_v3 = vpop.f32.mrf.mxu0 }
 0x110   : > { %1350 = vperm.xlu1 %2655, %v2554_v40   ;;  %v2497_v4 = vadd.f32 %v2496_v3, %v2495_v63  ;;  %v1180_v40 = vld [vmem:[%s3671_s5] sm:$0xf] }
 0x111   : > { %v2498_v22 = vpop.f32.mrf.mxu0 }
 0x113   : > { %2673 = vset.pattern.permute.xlu0 %v2747_v1  ;;  %v2499_v25 = vpop.f32.mrf.mxu0 }
 0x114   : > { %2656 = vset.pattern.permute.xlu1 %v2747_v1  ;;  %858 = vperm.xlu0 %2673, %v2986_v49   ;;  %v2500_v27 = vadd.f32 %v2499_v25, %v2498_v22  ;;  %v1407_v22 = vld [vmem:[%s3075_s22 + $0x10] sm:$0xff] }
 0x115   : > { %1188 = vperm.xlu1 %2656, %v1152_v41  }
 0x118   : > { %863 = vperm.xlu0 %2673, %v2991_v51  }
 0x119   : > { %2657 = vset.pattern.permute.xlu1 %v2746_v0 }
 0x11a   : > { %1238 = vperm.xlu1 %2657, %v1152_v41  }
 0x11c   : > { %2678 = vset.pattern.permute.xlu0 %v2748_v37 }
 0x11d   : > { %965 = vperm.xlu0 %2678, %v2991_v51  }
 0x11e   : > { %2658 = vset.pattern.permute.xlu1 %v2748_v37 }
 0x11f   : > { %1290 = vperm.xlu1 %2658, %v1152_v41   ;;  %v3121_v41 = vsub.s32 2, %v3105_v32 }
 0x121   : > { %2679 = vset.pattern.permute.xlu0 %v2749_v38 }
 0x122   : > { %1017 = vperm.xlu0 %2679, %v2991_v51  }
 0x123   : > { %2660 = vset.pattern.permute.xlu1 %v2747_v1 }
 0x124   : > { %1213 = vperm.xlu1 %2660, %v2964_v42  }
 0x126   : > { %2680 = vset.pattern.permute.xlu0 %v2747_v1 }
 0x127   : > { %868 = vperm.xlu0 %2680, %v2485_v54  }
 0x128   : > { %2661 = vset.pattern.permute.xlu1 %v2746_v0 }
 0x129   : > { %1258 = vperm.xlu1 %2661, %v2964_v42  }
 0x12b   : > { %2681 = vset.pattern.permute.xlu0 %v2746_v0 }
 0x12c   : > { %917 = vperm.xlu0 %2681, %v2485_v54  }
 0x12d   : > { %2663 = vset.pattern.permute.xlu1 %v2747_v1 }
 0x12e   : > { %1203 = vperm.xlu1 %2663, %v2969_v43  }
 0x130   : > { %2683 = vset.pattern.permute.xlu0 %v2749_v38 }
 0x131   : > { %1021 = vperm.xlu0 %2683, %v2485_v54  }
 0x132   : > { %2664 = vset.pattern.permute.xlu1 %v2746_v0 }
 0x133   : > { %1250 = vperm.xlu1 %2664, %v2969_v43  }
 0x135   : > { %2686 = vset.pattern.permute.xlu0 %v2748_v37 }
 0x136   : > { %973 = vperm.xlu0 %2686, %v2488_v58  }
 0x137   : > { %2665 = vset.pattern.permute.xlu1 %v2748_v37 }
 0x138   : > { %1302 = vperm.xlu1 %2665, %v2969_v43   ;;  %v3124_v43 = vrot.slane %v1180_v40, %v3111_v34 }
 0x13a   : > { %2688 = vset.pattern.permute.xlu0 %v2747_v1 }
 0x13b   : > { %878 = vperm.xlu0 %2688, %v2491_v60  }
 0x13c   : > { %2668 = vset.pattern.permute.xlu1 %v2746_v0 }
 0x13d   : > { %1262 = vperm.xlu1 %2668, %v2974_v44  }
 0x13f   : > { %2690 = vset.pattern.permute.xlu0 %v2748_v37 }
 0x140   : > { %977 = vperm.xlu0 %2690, %v2491_v60  }
 0x141   : > { %2669 = vset.pattern.permute.xlu1 %v2748_v37 }
 0x142   : > { %1314 = vperm.xlu1 %2669, %v2974_v44  }
 0x144   : > { %2691 = vset.pattern.permute.xlu0 %v2749_v38 }
 0x145   : > { %1029 = vperm.xlu0 %2691, %v2491_v60  }
 0x146   : > { %2670 = vset.pattern.permute.xlu1 %v2746_v0 }
 0x147   : > { %1254 = vperm.xlu1 %2670, %v2979_v46  }
 0x149   : > { %2693 = vset.pattern.permute.xlu0 %v2746_v0 }
 0x14a   : > { %929 = vperm.xlu0 %2693, %v2494_v2  }
 0x14b   : > { %2672 = vset.pattern.permute.xlu1 %v2749_v38 }
 0x14c   : > { %1358 = vperm.xlu1 %2672, %v2979_v46   ;;  %v3130_v46 = vrot.slane %v1180_v40, %v3121_v41 }
 0x14e   : > { %933 = vperm.xlu0 %2693, %v2497_v4  }
 0x150   : > { %2674 = vset.pattern.permute.xlu1 %v2746_v0 }
 0x151   : > { %909 = vperm.xlu1 %2674, %v2986_v49  }
 0x152   : > { %2697 = vset.pattern.permute.xlu0 %v2748_v37 }
 0x153   : > { %985 = vperm.xlu0 %2697, %v2497_v4  }
 0x155   : > { %2675 = vset.pattern.permute.xlu1 %v2748_v37 }
 0x156   : > { %961 = vperm.xlu1 %2675, %v2986_v49  }
 0x157   : > { %2703 = vset.pattern.permute.xlu0 %v2749_v38 }
 0x158   : > { %1366 = vperm.xlu0 %2703, %v2974_v44   ;;  %v3127_v44 = vrot.slane %v1180_v40, %v3114_v35 }
 0x15a   : > { %2676 = vset.pattern.permute.xlu1 %v2749_v38 }
 0x15b   : > { %1013 = vperm.xlu1 %2676, %v2986_v49  }
 0x15c   : > { %2705 = vset.pattern.permute.xlu0 %v2747_v1 }
 0x15d   : > { %1469 = vperm.xlu0 %2705, %v3078_v18  }
 0x15f   : > { %2677 = vset.pattern.permute.xlu1 %v2746_v0 }
 0x160   : > { %913 = vperm.xlu1 %2677, %v2991_v51  }
 0x161   : > { %1459 = vperm.xlu0 %2705, %v3100_v30  }
 0x163   : > { %v3038_v5 = vpop.permute.xlu1 %1193  ;;  %v3084_v20 = vpop.permute.xlu0 %1242 }
 0x164   : > { %2682 = vset.pattern.permute.xlu1 %v2748_v37 }
 0x165   : > { %969 = vperm.xlu1 %2682, %v2485_v54   ;;  %v3139_v54 = vld [vmem:[%s3075_s22 + $0x18] sm:$0xff] }
 0x166   : > { %1449 = vperm.xlu0 %2705, %v3139_v54  }
 0x168   : > { %v3041_v6 = vpop.permute.xlu1 %1346  ;;  %v3089_v23 = vpop.permute.xlu0 %1294 }
 0x169   : > { %2684 = vset.pattern.permute.xlu1 %v2747_v1 }
 0x16a   : > { %873 = vperm.xlu1 %2684, %v2488_v58   ;;  %1439 = vperm.xlu0 %2705, %v3145_v57  }
 0x16d   : > { %v3044_v7 = vpop.permute.xlu1 %1183  ;;  %v3094_v26 = vpop.permute.xlu0 %1234 }
 0x16e   : > { %2685 = vset.pattern.permute.xlu1 %v2746_v0  ;;  %2715 = vset.pattern.permute.xlu0 %v2748_v37 }
 0x16f   : > { %921 = vperm.xlu1 %2685, %v2488_v58   ;;  %1561 = vperm.xlu0 %2715, %v1411_v56  }
 0x172   : > { %v3053_v10 = vpop.permute.xlu1 %1286  ;;  %v3107_v33 = vpop.permute.xlu0 %1342 }
 0x173   : > { %2687 = vset.pattern.permute.xlu1 %v2749_v38  ;;  %1553 = vperm.xlu0 %2715, %v1409_v8  }
 0x174   : > { %1025 = vperm.xlu1 %2687, %v2488_v58  }
 0x177   : > { %v3062_v15 = vpop.permute.xlu1 %1338  ;;  %v1311_v36 = vpop.permute.xlu0 %1310  ;;  %1545 = vperm.xlu0 %2715, %v1407_v22  }
 0x178   : > { %2689 = vset.pattern.permute.xlu1 %v2746_v0  ;;  %v1327_v50 = vmul.f32 %v3130_v46, %v1311_v36  ;;  %v3173_v36 = vld [vmem:[%s3075_s22] sm:$0xff] }
 0x179   : > { %925 = vperm.xlu1 %2689, %v2491_v60   ;;  %v1046_v60 = vsub.s32 3, %v3105_v32 }
 0x17b   : > { %v3156_v63 = vrot.slane %v1180_v40, %v1046_v60  ;;  %1537 = vperm.xlu0 %2715, %v3173_v36  }
 0x17c   : > { %v3065_v16 = vpop.permute.xlu1 %1198  ;;  %v1355_v47 = vpop.permute.xlu0 %1354 }
 0x17d   : > { %2692 = vset.pattern.permute.xlu1 %v2747_v1  ;;  %v1377_v3 = vmul.f32 %v3156_v63, %v1355_v47 }
 0x17e   : > { %883 = vperm.xlu1 %2692, %v2494_v2  }
 0x181   : > { %v3068_v17 = vpop.permute.xlu1 %1246  ;;  %v1219_v55 = vpop.permute.xlu0 %1218 }
 0x182   : > { %2694 = vset.pattern.permute.xlu1 %v2748_v37  ;;  %v1232_v13 = vmul.f32 %v3127_v44, %v1219_v55 }
 0x183   : > { %981 = vperm.xlu1 %2694, %v2494_v2  }
 0x186   : > { %v3081_v19 = vpop.permute.xlu1 %1298 }
 0x187   : > { %2695 = vset.pattern.permute.xlu1 %v2749_v38 }
 0x188   : > { %1033 = vperm.xlu1 %2695, %v2494_v2  }
 0x18b   : > { %v3086_v21 = vpop.permute.xlu1 %1350 }
 0x18c   : > { %2696 = vset.pattern.permute.xlu1 %v2747_v1 }
 0x18d   : > { %888 = vperm.xlu1 %2696, %v2497_v4  }
 0x190   : > { %v3091_v24 = vpop.permute.xlu1 %1188 }
 0x191   : > { %2698 = vset.pattern.permute.xlu1 %v2749_v38 }
 0x192   : > { %1037 = vperm.xlu1 %2698, %v2497_v4  }
 0x195   : > { %v3096_v28 = vpop.permute.xlu1 %1238 }
 0x196   : > { %2699 = vset.pattern.permute.xlu1 %v2747_v1 }
 0x197   : > { %893 = vperm.xlu1 %2699, %v2500_v27  }
 0x19a   : > { %v3103_v31 = vpop.permute.xlu1 %1290 }
 0x19b   : > { %2700 = vset.pattern.permute.xlu1 %v2746_v0 }
 0x19c   : > { %937 = vperm.xlu1 %2700, %v2500_v27  }
 0x19f   : > { %v1214_v39 = vpop.permute.xlu1 %1213 }
 0x1a0   : > { %2701 = vset.pattern.permute.xlu1 %v2748_v37  ;;  %v1231_v48 = vmul.f32 %v3127_v44, %v1214_v39 }
 0x1a1   : > { %989 = vperm.xlu1 %2701, %v2500_v27  }
 0x1a4   : > { %v1259_v45 = vpop.permute.xlu1 %1258 }
 0x1a5   : > { %v1275_v49 = vmul.f32 %v3124_v43, %v1259_v45  ;;  %2702 = vset.pattern.permute.xlu1 %v2749_v38 }
 0x1a6   : > { %1041 = vperm.xlu1 %2702, %v2500_v27  }
 0x1a7   : > { %v1283_v51 = vadd.f32 %v1275_v49, %v1231_v48  ;;  %v855_v49 = vld [vmem:[%s3693_s26] sm:$0xf] }
 0x1a8   : > { %v3194_v55 = vrot.slane %v855_v49, %v3114_v35 }
 0x1a9   : > { %v1204_v52 = vpop.permute.xlu1 %1203  ;;  %v3136_v53 = vadd.f32 %v1327_v50, %v1283_v51  ;;  %v3190_v51 = vrot.slane %v855_v49, %v3111_v34 }
 0x1aa   : > { %1362 = vperm.xlu1 %2702, %v2964_v42   ;;  %v1229_v38 = vmul.f32 %v3127_v44, %v1204_v52  ;;  %v3152_v42 = vpop.permute.xlu0 %1208 }
 0x1ae   : > { %v1251_v58 = vpop.permute.xlu1 %1250  ;;  %2704 = vset.pattern.permute.xlu1 %v2747_v1  ;;  %v3161_v9 = vpop.permute.xlu0 %1306 }
 0x1af   : > { %v1273_v59 = vmul.f32 %v3124_v43, %v1251_v58  ;;  %1464 = vperm.xlu1 %2704, %v1411_v56  }
 0x1b1   : > { %v1281_v61 = vadd.f32 %v1273_v59, %v1229_v38 }
 0x1b2   : > { %v859_v27 = vpop.permute.xlu0 %858 }
 0x1b3   : > { %v1303_v62 = vpop.permute.xlu1 %1302  ;;  %2706 = vset.pattern.permute.xlu1 %v2746_v0  ;;  %v900_v59 = vmul.f32 %v3194_v55, %v859_v27 }
 0x1b4   : > { %v1325_v2 = vmul.f32 %v3130_v46, %v1303_v62  ;;  %1509 = vperm.xlu1 %2706, %v1411_v56   ;;  %v3197_v56 = vrot.slane %v855_v49, %v3121_v41 }
 0x1b6   : > { %v1333_v4 = vadd.f32 %v1325_v2, %v1281_v61  ;;  %v864_v45 = vpop.permute.xlu0 %863  ;;  %v3202_v61 = vrot.slane %v855_v49, %v1046_v60  ;;  %v1321_v60 = vmul.f32 %v3130_v46, %v3053_v10  ;;  %v1373_v10 = vmul.f32 %v3156_v63, %v3062_v15 }
 0x1b7   : > { %v1374_v15 = vmul.f32 %v3156_v63, %v3107_v33 }
 0x1b8   : > { %v3163_v11 = vadd.f32 %v1377_v3, %v1333_v4  ;;  %v1263_v12 = vpop.permute.xlu1 %1262  ;;  %1513 = vperm.xlu1 %2706, %v3078_v18   ;;  %v1269_v4 = vmul.f32 %v3124_v43, %v3094_v26 }
 0x1b9   : > { %v1276_v14 = vmul.f32 %v3124_v43, %v1263_v12  ;;  %v1270_v12 = vmul.f32 %v3124_v43, %v3096_v28 }
 0x1bb   : > { %v1284_v25 = vadd.f32 %v1276_v14, %v1232_v13  ;;  %v1226_v14 = vmul.f32 %v3127_v44, %v3091_v24 }
 0x1bc   : > { %2707 = vset.pattern.permute.xlu1 %v2748_v37 }
 0x1bd   : > { %v1315_v29 = vpop.permute.xlu1 %1314  ;;  %1565 = vperm.xlu1 %2707, %v3078_v18   ;;  %v966_v18 = vpop.permute.xlu0 %965 }
 0x1be   : > { %v1328_v32 = vmul.f32 %v3130_v46, %v1315_v29  ;;  %v997_v24 = vmul.f32 %v3197_v56, %v966_v18 }
 0x1c0   : > { %v3176_v39 = vadd.f32 %v1328_v32, %v1284_v25  ;;  %v1322_v25 = vmul.f32 %v3130_v46, %v3103_v31 }
 0x1c1   : > { %2708 = vset.pattern.permute.xlu1 %v2747_v1  ;;  %v1018_v50 = vpop.permute.xlu0 %1017 }
 0x1c2   : > { %v3179_v40 = vpop.permute.xlu1 %1254  ;;  %1454 = vperm.xlu1 %2708, %v1409_v8  }
 0x1c5   : > { %v869_v38 = vpop.permute.xlu0 %868 }
 0x1c6   : > { %2709 = vset.pattern.permute.xlu1 %v2746_v0 }
 0x1c7   : > { %v3182_v47 = vpop.permute.xlu1 %1358  ;;  %1501 = vperm.xlu1 %2709, %v1409_v8   ;;  %v1225_v8 = vmul.f32 %v3127_v44, %v3044_v7  ;;  %v901_v7 = vmul.f32 %v3194_v55, %v864_v45 }
 0x1c9   : > { %v918_v26 = vpop.permute.xlu0 %917  ;;  %v1277_v32 = vadd.f32 %v1269_v4, %v1225_v8 }
 0x1cb   : > { %1505 = vperm.xlu1 %2709, %v3100_v30   ;;  %v1329_v49 = vadd.f32 %v1321_v60, %v1277_v32 }
 0x1cc   : > { %v910_v48 = vpop.permute.xlu1 %909 }
 0x1cd   : > { %v944_v58 = vmul.f32 %v3190_v51, %v910_v48  ;;  %v1278_v48 = vadd.f32 %v1270_v12, %v1226_v14  ;;  %v1381_v18 = vadd.f32 %v1373_v10, %v1329_v49 }
 0x1cf   : > { %2710 = vset.pattern.permute.xlu1 %v2748_v37  ;;  %v952_v2 = vadd.f32 %v944_v58, %v900_v59  ;;  %v1330_v45 = vadd.f32 %v1322_v25, %v1278_v48  ;;  %v902_v58 = vmul.f32 %v3194_v55, %v869_v38  ;;  %v946_v59 = vmul.f32 %v3190_v51, %v918_v26 }
 0x1d0   : > { %1557 = vperm.xlu1 %2710, %v3100_v30   ;;  %v1271_v25 = vmul.f32 %v3124_v43, %v3084_v20  ;;  %v1227_v26 = vmul.f32 %v3127_v44, %v3038_v5  ;;  %v1272_v5 = vmul.f32 %v3124_v43, %v3068_v17  ;;  %v1375_v17 = vmul.f32 %v3156_v63, %v3041_v6 }
 0x1d1   : > { %v962_v52 = vpop.permute.xlu1 %961  ;;  %v1382_v8 = vadd.f32 %v1374_v15, %v1330_v45 }
 0x1d2   : > { %v996_v62 = vmul.f32 %v3197_v56, %v962_v52  ;;  %v1049_v52 = vmul.f32 %v3202_v61, %v1018_v50  ;;  %v954_v50 = vadd.f32 %v946_v59, %v902_v58  ;;  %v1279_v10 = vadd.f32 %v1271_v25, %v1227_v26 }
 0x1d3   : > { %v1324_v58 = vmul.f32 %v3130_v46, %v3081_v19 }
 0x1d4   : > { %2711 = vset.pattern.permute.xlu1 %v2747_v1  ;;  %v1004_v13 = vadd.f32 %v996_v62, %v952_v2 }
 0x1d5   : > { %1444 = vperm.xlu1 %2711, %v1407_v22  }
 0x1d6   : > { %v1014_v30 = vpop.permute.xlu1 %1013 }
 0x1d7   : > { %v1048_v3 = vmul.f32 %v3202_v61, %v1014_v30 }
 0x1d9   : > { %2712 = vset.pattern.permute.xlu1 %v2746_v0  ;;  %v1056_v29 = vadd.f32 %v1048_v3, %v1004_v13  ;;  %v1022_v3 = vpop.permute.xlu0 %1021 }
 0x1da   : > { %1493 = vperm.xlu1 %2712, %v1407_v22   ;;  %v3224_v22 = vld [vmem:[%s3672_s6] ss:$0 sm:$0xff] }
 0x1db   : > { %v914_v27 = vpop.permute.xlu1 %913  ;;  %v1070_v62 = vadd.f32 %v3224_v22, %v1056_v29  ;;  %v1323_v29 = vmul.f32 %v3130_v46, %v3089_v23 }
 0x1dc   : > { %v945_v28 = vmul.f32 %v3190_v51, %v914_v27 }
 0x1dd   : > { %v1389_v12 = vadd.f32 %v1381_v18, %v1070_v62  ;;  %v974_v33 = vpop.permute.xlu0 %973  ;;  %v1331_v45 = vadd.f32 %v1323_v29, %v1279_v10 }
 0x1de   : > { %v953_v31 = vadd.f32 %v945_v28, %v901_v7  ;;  %1497 = vperm.xlu1 %2712, %v3139_v54   ;;  %v1050_v28 = vmul.f32 %v3202_v61, %v1022_v3 }
 0x1df   : > { %v1397_v27 = vmax.f32 %v1389_v12, 0.0  ;;  %v1383_v15 = vadd.f32 %v1375_v17, %v1331_v45 }
 0x1e0   : > { %v1005_v30 = vadd.f32 %v997_v24, %v953_v31  ;;  %v970_v2 = vpop.permute.xlu1 %969  ;;  %v999_v31 = vmul.f32 %v3197_v56, %v974_v33 }
 0x1e1   : > { %v998_v13 = vmul.f32 %v3197_v56, %v970_v2  ;;  %v879_v23 = vpop.permute.xlu0 %878 }
 0x1e2   : > { %v1057_v4 = vadd.f32 %v1049_v52, %v1005_v30  ;;  %2713 = vset.pattern.permute.xlu1 %v2748_v37  ;;  %v1228_v52 = vmul.f32 %v3127_v44, %v3065_v16 }
 0x1e3   : > { %1549 = vperm.xlu1 %2713, %v3139_v54   ;;  %v1006_v7 = vadd.f32 %v998_v13, %v954_v50 }
 0x1e4   : > { %v1071_v38 = vadd.f32 %v3224_v22, %v1057_v4  ;;  %v1280_v30 = vadd.f32 %v1272_v5, %v1228_v52 }
 0x1e5   : > { %v874_v60 = vpop.permute.xlu1 %873  ;;  %v1058_v24 = vadd.f32 %v1050_v28, %v1006_v7  ;;  %v978_v18 = vpop.permute.xlu0 %977 }
 0x1e6   : > { %v1390_v14 = vadd.f32 %v1382_v8, %v1071_v38  ;;  %v903_v20 = vmul.f32 %v3194_v55, %v874_v60  ;;  %v1332_v16 = vadd.f32 %v1324_v58, %v1280_v30  ;;  %v1000_v33 = vmul.f32 %v3197_v56, %v978_v18 }
 0x1e7   : > { %2714 = vset.pattern.permute.xlu1 %v2747_v1  ;;  %v1072_v2 = vadd.f32 %v3224_v22, %v1058_v24 }
 0x1e8   : > { %v1398_v54 = vmax.f32 %v1390_v14, 0.0  ;;  %1434 = vperm.xlu1 %2714, %v3173_v36  }
 0x1e9   : > { %v1391_v4 = vadd.f32 %v1383_v15, %v1072_v2  ;;  %v1030_v14 = vpop.permute.xlu0 %1029 }
 0x1ea   : > { %v922_v32 = vpop.permute.xlu1 %921  ;;  %v1425_v48 = vpack.c.bf16 %v1398_v54, %v1397_v27  ;;  %v1274_v27 = vmul.f32 %v3124_v43, %v3179_v40  ;;  %v1052_v54 = vmul.f32 %v3202_v61, %v1030_v14  ;;  %v1326_v43 = vmul.f32 %v3130_v46, %v3161_v9 }
 0x1eb   : > { %v947_v1 = vmul.f32 %v3190_v51, %v922_v32  ;;  %v1399_v38 = vmax.f32 %v1391_v4, 0.0 }
 0x1ec   : > { %2563 = vmatprep.mubr.msk.bf16.mxu1 %vm1588_vm1, %v1425_v48  ;;  %2716 = vset.pattern.permute.xlu1 %v2746_v0  ;;  %v1376_v0 = vmul.f32 %v3156_v63, %v3086_v21  ;;  %v904_v21 = vmul.f32 %v3194_v55, %v879_v23 }
 0x1ed   : > { %v955_v49 = vadd.f32 %v947_v1, %v903_v20  ;;  %1485 = vperm.xlu1 %2716, %v3173_v36   ;;  %v930_v32 = vpop.permute.xlu0 %929 }
 0x1ee   : > { %v1384_v19 = vadd.f32 %v1376_v0, %v1332_v16  ;;  %v949_v48 = vmul.f32 %v3190_v51, %v930_v32 }
 0x1ef   : > { %v1026_v59 = vpop.permute.xlu1 %1025  ;;  %v1007_v62 = vadd.f32 %v999_v31, %v955_v49 }
 0x1f0   : > { %v1051_v36 = vmul.f32 %v3202_v61, %v1026_v59 }
 0x1f1   : > { %1489 = vperm.xlu1 %2716, %v3145_v57   ;;  %v934_v59 = vpop.permute.xlu0 %933 }
 0x1f2   : > { %v1059_v3 = vadd.f32 %v1051_v36, %v1007_v62  ;;  %v950_v16 = vmul.f32 %v3190_v51, %v934_v59 }
 0x1f4   : > { %v1073_v6 = vadd.f32 %v3224_v22, %v1059_v3  ;;  %v926_v8 = vpop.permute.xlu1 %925 }
 0x1f5   : > { %v948_v50 = vmul.f32 %v3190_v51, %v926_v8  ;;  %2717 = vset.pattern.permute.xlu1 %v2748_v37  ;;  %v1230_v37 = vmul.f32 %v3127_v44, %v3152_v42  ;;  %v1378_v44 = vmul.f32 %v3156_v63, %v3182_v47  ;;  %v986_v0 = vpop.permute.xlu0 %985 }
 0x1f6   : > { %v1392_v12 = vadd.f32 %v1384_v19, %v1073_v6  ;;  %1541 = vperm.xlu1 %2717, %v3145_v57   ;;  %v1002_v4 = vmul.f32 %v3197_v56, %v986_v0 }
 0x1f7   : > { %v956_v60 = vadd.f32 %v948_v50, %v904_v21  ;;  %v1282_v28 = vadd.f32 %v1274_v27, %v1230_v37 }
 0x1f8   : > { %v1400_v13 = vmax.f32 %v1392_v12, 0.0 }
 0x1f9   : > { %v884_v25 = vpop.permute.xlu1 %883  ;;  %v1008_v7 = vadd.f32 %v1000_v33, %v956_v60  ;;  %v1334_v10 = vadd.f32 %v1326_v43, %v1282_v28  ;;  %v1367_v15 = vpop.permute.xlu0 %1366 }
 0x1fa   : > { %v1426_v26 = vpack.c.bf16 %v1400_v13, %v1399_v38  ;;  %v905_v57 = vmul.f32 %v3194_v55, %v884_v25  ;;  %v1380_v13 = vmul.f32 %v3156_v63, %v1367_v15 }
 0x1fb   : > { %v1060_v20 = vadd.f32 %v1052_v54, %v1008_v7  ;;  %v1386_v49 = vadd.f32 %v1378_v44, %v1334_v10 }
 0x1fc   : > { %2564 = vmatmul.mubr.msk.bf16.vlgmr.msra.gmra.mxu1 %vm1588_vm1, %v1426_v26  ;;  %v957_v40 = vadd.f32 %v949_v48, %v905_v57  ;;  %v1388_v27 = vadd.f32 %v1380_v13, %v3176_v39  ;;  %v1824_v39 = vld [vmem:[%s3679_s13] sm:$0x7] }
 0x1fd   : > { %v1074_v42 = vadd.f32 %v3224_v22, %v1060_v20  ;;  %v3295_v19 = vpop.permute.xlu0 %1469  ;;  %v3332_v43 = vrot.slane %v1824_v39, %v3111_v34  ;;  %v3338_v10 = vrot.slane %v1824_v39, %v3121_v41 }
 0x1fe   : > { %v982_v29 = vpop.permute.xlu1 %981 }
 0x1ff   : > { %v1001_v1 = vmul.f32 %v3197_v56, %v982_v29  ;;  %v1393_v58 = vadd.f32 %v3163_v11, %v1074_v42 }
 0x201   : > { %v1009_v24 = vadd.f32 %v1001_v1, %v957_v40  ;;  %v1401_v9 = vmax.f32 %v1393_v58, 0.0 }
 0x203   : > { %v1034_v5 = vpop.permute.xlu1 %1033 }
 0x204   : > { %v1053_v31 = vmul.f32 %v3202_v61, %v1034_v5 }
 0x206   : > { %v1061_v23 = vadd.f32 %v1053_v31, %v1009_v24 }
 0x208   : > { %v1075_v45 = vadd.f32 %v3224_v22, %v1061_v23  ;;  %v889_v52 = vpop.permute.xlu1 %888 }
 0x209   : > { %v906_v36 = vmul.f32 %v3194_v55, %v889_v52 }
 0x20a   : > { %v1394_v17 = vadd.f32 %v1386_v49, %v1075_v45 }
 0x20b   : > { %v958_v3 = vadd.f32 %v950_v16, %v906_v36 }
 0x20c   : > { %v1402_v46 = vmax.f32 %v1394_v17, 0.0 }
 0x20d   : > { %v1038_v62 = vpop.permute.xlu1 %1037  ;;  %v1010_v50 = vadd.f32 %v1002_v4, %v958_v3 }
 0x20e   : > { %v1427_v30 = vpack.c.bf16 %v1402_v46, %v1401_v9  ;;  %v1054_v21 = vmul.f32 %v3202_v61, %v1038_v62 }
 0x210   : > { %2567 = vmatprep.mubr.msk.bf16.mxu1 %vm1588_vm1, %v1427_v30  ;;  %v1062_v25 = vadd.f32 %v1054_v21, %v1010_v50 }
 0x212   : > { %v894_v47 = vpop.permute.xlu1 %893  ;;  %v1076_v7 = vadd.f32 %v3224_v22, %v1062_v25 }
 0x213   : > { %v907_v6 = vmul.f32 %v3194_v55, %v894_v47 }
 0x217   : > { %v938_v2 = vpop.permute.xlu1 %937 }
 0x218   : > { %v951_v18 = vmul.f32 %v3190_v51, %v938_v2  ;;  %v3303_v51 = vpop.permute.xlu0 %1459 }
 0x21a   : > { %v959_v12 = vadd.f32 %v951_v18, %v907_v6 }
 0x21c   : > { %v990_v11 = vpop.permute.xlu1 %989  ;;  %v3310_v57 = vpop.permute.xlu0 %1449 }
 0x21d   : > { %v1003_v8 = vmul.f32 %v3197_v56, %v990_v11 }
 0x21f   : > { %v1011_v60 = vadd.f32 %v1003_v8, %v959_v12 }
 0x220   : > { %v3322_v20 = vpop.permute.xlu0 %1439 }
 0x221   : > { %v1042_v38 = vpop.permute.xlu1 %1041 }
 0x222   : > { %v1055_v14 = vmul.f32 %v3202_v61, %v1042_v38 }
 0x224   : > { %v1063_v33 = vadd.f32 %v1055_v14, %v1011_v60  ;;  %v3353_v49 = vpop.permute.xlu0 %1561 }
 0x225   : > { %v1363_v26 = vpop.permute.xlu1 %1362  ;;  %v1867_v45 = vmul.f32 %v3338_v10, %v3353_v49 }
 0x226   : > { %v1077_v55 = vadd.f32 %v3224_v22, %v1063_v33  ;;  %v1379_v56 = vmul.f32 %v3156_v63, %v1363_v26  ;;  %v2080_v63 = vld [vmem:[%s3682_s16] sm:$0x7] }
 0x227   : > { %v3329_v1 = vrot.slane %v2080_v63, %v3114_v35  ;;  %v3335_v40 = vrot.slane %v2080_v63, %v3111_v34  ;;  %v3341_v5 = vrot.slane %v2080_v63, %v3121_v41 }
 0x228   : > { %v1396_v37 = vadd.f32 %v1388_v27, %v1077_v55  ;;  %v1387_v54 = vadd.f32 %v1379_v56, %v3136_v53  ;;  %v3326_v53 = vrot.slane %v1824_v39, %v3114_v35  ;;  %v3395_v38 = vpop.permute.xlu0 %1553 }
 0x229   : > { %v2123_v52 = vmul.f32 %v3341_v5, %v3353_v49  ;;  %v2092_v30 = vmul.f32 %v3329_v1, %v3295_v19  ;;  %v1865_v13 = vmul.f32 %v3338_v10, %v3395_v38  ;;  %v2121_v60 = vmul.f32 %v3341_v5, %v3395_v38 }
 0x22a   : > { %v1395_v29 = vadd.f32 %v1387_v54, %v1076_v7  ;;  %v3312_v61 = vpop.permute.xlu1 %1464  ;;  %v1404_v28 = vmax.f32 %v1396_v37, 0.0  ;;  %v1836_v62 = vmul.f32 %v3326_v53, %v3295_v19  ;;  %v1834_v55 = vmul.f32 %v3326_v53, %v3303_v51 }
 0x22b   : > { %v1835_v42 = vmul.f32 %v3326_v53, %v3312_v61  ;;  %v2091_v24 = vmul.f32 %v3329_v1, %v3312_v61  ;;  %v2090_v56 = vmul.f32 %v3329_v1, %v3303_v51 }
 0x22c   : > { %v1403_v32 = vmax.f32 %v1395_v29, 0.0 }
 0x22e   : > { %v1428_v48 = vpack.c.bf16 %v1404_v28, %v1403_v32 }
 0x22f   : > { %v3320_v22 = vpop.permute.xlu1 %1509 }
 0x230   : > { %2568 = vmatmul.mubr.msk.bf16.gmra.mxu1 %vm1588_vm1, %v1428_v48  ;;  %v1847_v31 = vmul.f32 %v3332_v43, %v3320_v22  ;;  %v2103_v23 = vmul.f32 %v3335_v40, %v3320_v22 }
 0x232   : > { %v1855_v17 = vadd.f32 %v1847_v31, %v1835_v42  ;;  %v2111_v46 = vadd.f32 %v2103_v23, %v2091_v24 }
 0x233   : > { %v3343_v44 = vpop.permute.xlu1 %1513 }
 0x234   : > { %v1848_v9 = vmul.f32 %v3332_v43, %v3343_v44  ;;  %v2104_v59 = vmul.f32 %v3335_v40, %v3343_v44  ;;  %v3369_v47 = vadd.f32 %v1867_v45, %v1855_v17  ;;  %v3371_v0 = vadd.f32 %v2123_v52, %v2111_v46  ;;  %v3427_v17 = vpop.permute.xlu0 %1545 }
 0x235   : > { %v1863_v46 = vmul.f32 %v3338_v10, %v3427_v17 }
 0x236   : > { %v1856_v16 = vadd.f32 %v1848_v9, %v1836_v62  ;;  %v2112_v3 = vadd.f32 %v2104_v59, %v2092_v30  ;;  %v2119_v9 = vmul.f32 %v3341_v5, %v3427_v17  ;;  %v1832_v59 = vmul.f32 %v3326_v53, %v3310_v57 }
 0x237   : > { %v2088_v62 = vmul.f32 %v3329_v1, %v3310_v57 }
 0x238   : > { %v3359_v58 = vpop.permute.xlu1 %1565 }
 0x239   : > { %v1868_v2 = vmul.f32 %v3338_v10, %v3359_v58  ;;  %v2124_v36 = vmul.f32 %v3341_v5, %v3359_v58 }
 0x23b   : > { %v3379_v18 = vadd.f32 %v1868_v2, %v1856_v16  ;;  %v3381_v11 = vadd.f32 %v2124_v36, %v2112_v3 }
 0x23d   : > { %v3377_v15 = vpop.permute.xlu1 %1454 }
 0x23e   : > { %v1833_v8 = vmul.f32 %v3326_v53, %v3377_v15  ;;  %v2089_v50 = vmul.f32 %v3329_v1, %v3377_v15 }
 0x242   : > { %v3383_v4 = vpop.permute.xlu1 %1501 }
 0x243   : > { %v1845_v21 = vmul.f32 %v3332_v43, %v3383_v4  ;;  %v2101_v12 = vmul.f32 %v3335_v40, %v3383_v4 }
 0x245   : > { %v1853_v25 = vadd.f32 %v1845_v21, %v1833_v8  ;;  %v2109_v33 = vadd.f32 %v2101_v12, %v2089_v50 }
 0x246   : > { %v3385_v6 = vpop.permute.xlu1 %1505 }
 0x247   : > { %v1846_v26 = vmul.f32 %v3332_v43, %v3385_v6  ;;  %v2102_v27 = vmul.f32 %v3335_v40, %v3385_v6  ;;  %v3411_v7 = vadd.f32 %v1865_v13, %v1853_v25  ;;  %v3413_v37 = vadd.f32 %v2121_v60, %v2109_v33 }
 0x249   : > { %v1854_v32 = vadd.f32 %v1846_v26, %v1834_v55  ;;  %v2110_v39 = vadd.f32 %v2102_v27, %v2090_v56  ;;  %v1830_v55 = vmul.f32 %v3326_v53, %v3322_v20  ;;  %v2086_v56 = vmul.f32 %v3329_v1, %v3322_v20 }
 0x24b   : > { %v3401_v14 = vpop.permute.xlu1 %1557 }
 0x24c   : > { %v1866_v54 = vmul.f32 %v3338_v10, %v3401_v14  ;;  %v2122_v29 = vmul.f32 %v3341_v5, %v3401_v14 }
 0x24e   : > { %v3419_v63 = vadd.f32 %v1866_v54, %v1854_v32  ;;  %v3421_v48 = vadd.f32 %v2122_v29, %v2110_v39 }
 0x250   : > { %v1445_v28 = vpop.permute.xlu1 %1444 }
 0x251   : > { %v1831_v31 = vmul.f32 %v3326_v53, %v1445_v28  ;;  %v2087_v23 = vmul.f32 %v3329_v1, %v1445_v28 }
 0x255   : > { %v1494_v42 = vpop.permute.xlu1 %1493 }
 0x256   : > { %v1843_v45 = vmul.f32 %v3332_v43, %v1494_v42  ;;  %v2099_v52 = vmul.f32 %v3335_v40, %v1494_v42 }
 0x258   : > { %v1851_v16 = vadd.f32 %v1843_v45, %v1831_v31  ;;  %v2107_v3 = vadd.f32 %v2099_v52, %v2087_v23 }
 0x259   : > { %v1498_v24 = vpop.permute.xlu1 %1497 }
 0x25a   : > { %v1844_v30 = vmul.f32 %v3332_v43, %v1498_v24  ;;  %v2100_v2 = vmul.f32 %v3335_v40, %v1498_v24  ;;  %v3440_v50 = vadd.f32 %v1863_v46, %v1851_v16  ;;  %v3442_v21 = vadd.f32 %v2119_v9, %v2107_v3 }
 0x25c   : > { %v1852_v13 = vadd.f32 %v1844_v30, %v1832_v59  ;;  %v2108_v60 = vadd.f32 %v2100_v2, %v2088_v62 }
 0x25e   : > { %v1550_v36 = vpop.permute.xlu1 %1549 }
 0x25f   : > { %v1864_v8 = vmul.f32 %v3338_v10, %v1550_v36  ;;  %v2120_v12 = vmul.f32 %v3341_v5, %v1550_v36 }
 0x261   : > { %v3445_v33 = vadd.f32 %v1864_v8, %v1852_v13  ;;  %v3447_v26 = vadd.f32 %v2120_v12, %v2108_v60 }
 0x263   : > { %v1435_v25 = vpop.permute.xlu1 %1434 }
 0x264   : > { %v1829_v54 = vmul.f32 %v3326_v53, %v1435_v25  ;;  %v2085_v29 = vmul.f32 %v3329_v1, %v1435_v25  ;;  %v1431_v53 = vld [vmem:[%s3676_s10] sm:$0x7] }
 0x265   : > { %v1475_v62 = vrot.slane %v1431_v53, %v3114_v35  ;;  %v1519_v30 = vrot.slane %v1431_v53, %v3111_v34 }
 0x267   : > { %v1482_v2 = vmul.f32 %v1475_v62, %v3312_v61  ;;  %v1526_v16 = vmul.f32 %v1519_v30, %v3320_v22  ;;  %v1479_v3 = vmul.f32 %v1475_v62, %v3310_v57  ;;  %v1523_v8 = vmul.f32 %v1519_v30, %v1498_v24 }
 0x268   : > { %v1486_v27 = vpop.permute.xlu1 %1485  ;;  %v1483_v12 = vmul.f32 %v1475_v62, %v3295_v19  ;;  %v1478_v13 = vmul.f32 %v1475_v62, %v1445_v28  ;;  %v1522_v60 = vmul.f32 %v1519_v30, %v1494_v42  ;;  %v1527_v35 = vmul.f32 %v1519_v30, %v3343_v44 }
 0x269   : > { %v1841_v39 = vmul.f32 %v3332_v43, %v1486_v27  ;;  %v2097_v31 = vmul.f32 %v3335_v40, %v1486_v27  ;;  %v1480_v34 = vmul.f32 %v1475_v62, %v3377_v15  ;;  %v1481_v61 = vmul.f32 %v1475_v62, %v3303_v51 }
 0x26a   : > { %v1476_v57 = vmul.f32 %v1475_v62, %v1435_v25  ;;  %v1520_v24 = vmul.f32 %v1519_v30, %v1486_v27  ;;  %v1525_v19 = vmul.f32 %v1519_v30, %v3385_v6  ;;  %v1531_v42 = vadd.f32 %v1523_v8, %v1479_v3 }
 0x26b   : > { %v3463_v9 = vadd.f32 %v1841_v39, %v1829_v54  ;;  %v3465_v59 = vadd.f32 %v2097_v31, %v2085_v29  ;;  %v1534_v44 = vadd.f32 %v1526_v16, %v1482_v2  ;;  %v1530_v51 = vadd.f32 %v1522_v60, %v1478_v13 }
 0x26c   : > { %v1490_v32 = vpop.permute.xlu1 %1489  ;;  %v1535_v31 = vadd.f32 %v1527_v35, %v1483_v12 }
 0x26d   : > { %v1842_v23 = vmul.f32 %v3332_v43, %v1490_v32  ;;  %v2098_v45 = vmul.f32 %v3335_v40, %v1490_v32  ;;  %v1571_v40 = vrot.slane %v1431_v53, %v3121_v41  ;;  %v1524_v41 = vmul.f32 %v1519_v30, %v3383_v4 }
 0x26e   : > { %v1521_v54 = vmul.f32 %v1519_v30, %v1490_v32 }
 0x26f   : > { %v3459_v52 = vadd.f32 %v1842_v23, %v1830_v55  ;;  %v3461_v46 = vadd.f32 %v2098_v45, %v2086_v56  ;;  %v1477_v55 = vmul.f32 %v1475_v62, %v3322_v20  ;;  %v1578_v22 = vmul.f32 %v1571_v40, %v3353_v49  ;;  %v3486_v20 = vpop.permute.xlu0 %1537 }
 0x270   : > { %v1575_v28 = vmul.f32 %v1571_v40, %v1550_v36  ;;  %v1579_v15 = vmul.f32 %v1571_v40, %v3359_v58  ;;  %v1576_v4 = vmul.f32 %v1571_v40, %v3395_v38  ;;  %v1574_v32 = vmul.f32 %v1571_v40, %v3427_v17 }
 0x271   : > { %v3483_v29 = vpop.permute.xlu1 %1541  ;;  %v1529_v25 = vadd.f32 %v1521_v54, %v1477_v55  ;;  %v1532_v27 = vadd.f32 %v1524_v41, %v1480_v34  ;;  %v1572_v6 = vmul.f32 %v1571_v40, %v3486_v20  ;;  %v1528_v36 = vadd.f32 %v1520_v24, %v1476_v57 }
 0x272   : > { %v1573_v49 = vmul.f32 %v1571_v40, %v3483_v29  ;;  %v1577_v45 = vmul.f32 %v1571_v40, %v3401_v14  ;;  %v1583_v53 = vadd.f32 %v1575_v28, %v1531_v42  ;;  %v1586_v62 = vadd.f32 %v1578_v22, %v1534_v44  ;;  %v2428_v14 = vld [vmem:[%s3677_s11] ss:$0 sm:$0xff] }
 0x273   : > { %v1533_v58 = vadd.f32 %v1525_v19, %v1481_v61  ;;  %v1582_v30 = vadd.f32 %v1574_v32, %v1530_v51  ;;  %v1584_v16 = vadd.f32 %v1576_v4, %v1532_v27  ;;  %v1587_v3 = vadd.f32 %v1579_v15, %v1535_v31  ;;  %v2718_v44 = vld [vmem:[%s3511_s28] sm:$0xff]   ;;  %v1816_v51 = vld [vmem:[%s3678_s12 + $0x10] sm:$0xff]  ;;  %v1815_v27 = vld [vmem:[%s3678_s12 + $0x8] sm:$0xff] }
 0x274   : > { %v1581_v2 = vadd.f32 %v1573_v49, %v1529_v25  ;;  %v1580_v8 = vadd.f32 %v1572_v6, %v1528_v36  ;;  %2579 = vmatprep.mubr.msk.bf16.mxu1 %vm1102_vm0, %v2718_v44  ;;  %v1814_v49 = vld [vmem:[%s3678_s12] sm:$0xff] }
 0x275   : > { %v1585_v35 = vadd.f32 %v1577_v45, %v1533_v58  ;;  %v1822_v31 = vpack.c.bf16 %v1815_v27, %v1814_v49  ;;  %v3544_v58 = vld [vmem:[%s3511_s28 + $0x18] sm:$0xff]  }
 0x2bc   : > { %v2565_v1 = vpop.f32.mrf.mxu1 }
 0x2bd   : > { %v1644_v34 = vadd.f32 %v2565_v1, %v1582_v30 }
 0x2be   : > { %v1635_v43 = vpop.f32.mrf.mxu1 }
 0x2bf   : > { %v1636_v57 = vadd.f32 %v1635_v43, %v1580_v8  ;;  %v1675_v1 = vadd.f32 %v2428_v14, %v1644_v34 }
 0x2c0   : > { %v2566_v56 = vpop.f32.mrf.mxu1 }
 0x2c1   : > { %v1647_v60 = vadd.f32 %v2566_v56, %v1583_v53  ;;  %v1673_v15 = vadd.f32 %v2428_v14, %v1636_v57  ;;  %v3534_v53 = vld [vmem:[%s3511_s28 + $0x8] sm:$0xff]  }
 0x2c2   : > { %v1638_v39 = vpop.f32.mrf.mxu1 }
 0x2c3   : > { %v1639_v41 = vadd.f32 %v1638_v39, %v1581_v2  ;;  %v1676_v24 = vadd.f32 %v2428_v14, %v1647_v60  ;;  %v1817_v39 = vld [vmem:[%s3678_s12 + $0x18] sm:$0xff] }
 0x2c4   : > { %v1823_v25 = vpack.c.bf16 %v1817_v39, %v1816_v51 }
 0x2c5   : > { %v1674_v42 = vadd.f32 %v2428_v14, %v1639_v41  ;;  %v1682_v4 = vpack.c.bf16 %v1676_v24, %v1675_v1 }
 0x2c6   : > { %2587 = vmatprep.subr.bf16.mxu0 %v1823_v25 }
 0x2c7   : > { %v1681_v32 = vpack.c.bf16 %v1674_v42, %v1673_v15  ;;  %2588 = vmatpush3.bf16.msra.mxu0 %v1823_v25  ;;  %v1862_v25 = vmul.f32 %v3338_v10, %v3483_v29 }
 0x2c8   : > { %2589 = vmatprep.subr.bf16.mxu0 %v1822_v31 }
 0x2cb   : > { %2590 = vmatpush3.bf16.msra.mxu0 %v1822_v31 }
 0x2f0   : > { %v2569_v23 = vpop.f32.mrf.mxu1 }
 0x2f1   : > { %v1660_v17 = vadd.f32 %v2569_v23, %v1586_v62  ;;  %v3537_v62 = vld [vmem:[%s3511_s28 + $0x10] sm:$0xff]  }
 0x2f2   : > { %v1651_v38 = vpop.f32.mrf.mxu1 }
 0x2f3   : > { %v1652_v12 = vadd.f32 %v1651_v38, %v1584_v16  ;;  %v3497_v54 = vadd.f32 %v2428_v14, %v1660_v17 }
 0x2f4   : > { %v2570_v13 = vpop.f32.mrf.mxu1 }
 0x2f5   : > { %v1663_v55 = vadd.f32 %v2570_v13, %v1587_v3  ;;  %v3501_v19 = vadd.f32 %v2428_v14, %v1652_v12 }
 0x2f6   : > { %v1654_v40 = vpop.f32.mrf.mxu1 }
 0x2f7   : > { %v3499_v61 = vadd.f32 %v2428_v14, %v1663_v55  ;;  %v1655_v22 = vadd.f32 %v1654_v40, %v1585_v35 }
 0x2f9   : > { %v1684_v56 = vpack.c.bf16 %v3499_v61, %v3497_v54  ;;  %v3505_v28 = vadd.f32 %v2428_v14, %v1655_v22 }
 0x2fb   : > { %1715 = vrot.lane.b32.xlu1 %v1684_v56, %s2750_s29  ;;  %v1683_v43 = vpack.c.bf16 %v3505_v28, %v3501_v19 }
 0x2fd   : > { %1713 = vrot.lane.b32.xlu0 %v1683_v43, %s2750_s29 }
 0x2ff   : > { %1711 = vrot.lane.b32.xlu1 %v1682_v4, %s2750_s29 }
 0x301   : > { %1709 = vrot.lane.b32.xlu0 %v1681_v32, %s2750_s29 }
 0x36d   : > { %v1716_v6 = vpop.permute.xlu1 %1715 }
 0x36e   : > { %2571 = vmatprep.subr.bf16.mxu1 %v1716_v6 }
 0x36f   : > { %2572 = vmatpush3.bf16.msra.mxu1 %v1716_v6  ;;  %v1714_v36 = vpop.permute.xlu0 %1713 }
 0x370   : > { %2573 = vmatprep.subr.bf16.mxu1 %v1714_v36 }
 0x371   : > { %v1712_v23 = vpop.permute.xlu1 %1711 }
 0x373   : > { %2574 = vmatpush3.bf16.msra.mxu1 %v1714_v36  ;;  %v1710_v45 = vpop.permute.xlu0 %1709 }
 0x374   : > { %2575 = vmatprep.subr.bf16.mxu1 %v1712_v23 }
 0x377   : > { %2576 = vmatpush3.bf16.msra.mxu1 %v1712_v23  ;;  %v1870_v23 = vadd.f32 %v1862_v25, %v3459_v52 }
 0x378   : > { %2577 = vmatprep.subr.bf16.mxu1 %v1710_v45 }
 0x37b   : > { %2578 = vmatpush3.bf16.msra.mxu1 %v1710_v45 }
 0x37e   : > { %2580 = vmatmul.mubr.msk.bf16.vlgmr.msra.gmra.mxu1 %vm1102_vm0, %v3534_v53 }
 0x37f   : > { %2583 = vmatprep.mubr.msk.bf16.mxu1 %vm1102_vm0, %v3537_v62 }
 0x386   : > { %2584 = vmatmul.mubr.msk.bf16.gmra.mxu1 %vm1102_vm0, %v3544_v58 }
 0x387   : > { %2607 = vmatprep.mubr.msk.bf16.mxu1 %vm1102_vm0, %v2718_v44 }
 0x43e   : > { %v2581_v30 = vpop.f32.mrf.mxu1 }
 0x43f   : > { %v1800_v3 = vadd.f32 %v2581_v30, %v1675_v1 }
 0x440   : > { %v1767_v38 = vpop.f32.mrf.mxu1 }
 0x441   : > { %v1798_v17 = vadd.f32 %v1767_v38, %v1673_v15  ;;  %v1808_v34 = vmax.f32 %v1800_v3, 0.0 }
 0x442   : > { %v2582_v2 = vpop.f32.mrf.mxu1 }
 0x443   : > { %v1801_v16 = vadd.f32 %v2582_v2, %v1676_v24  ;;  %v1806_v55 = vmax.f32 %v1798_v17, 0.0  ;;  %v2441_v2 = vld [vmem:[%s3680_s14] ss:$0 sm:$0xff] }
 0x444   : > { %v1770_v8 = vpop.f32.mrf.mxu1 }
 0x445   : > { %v1799_v13 = vadd.f32 %v1770_v8, %v1674_v42  ;;  %v1809_v60 = vmax.f32 %v1801_v16, 0.0 }
 0x446   : > { %v2585_v12 = vpop.f32.mrf.mxu1 }
 0x447   : > { %v1807_v35 = vmax.f32 %v1799_v13, 0.0  ;;  %v1819_v41 = vpack.c.bf16 %v1809_v60, %v1808_v34  ;;  %v1804_v24 = vadd.f32 %v2585_v12, %v3497_v54 }
 0x448   : > { %v1783_v14 = vpop.f32.mrf.mxu1 }
 0x449   : > { %v1818_v40 = vpack.c.bf16 %v1807_v35, %v1806_v55  ;;  %v1802_v57 = vadd.f32 %v1783_v14, %v3501_v19  ;;  %v1812_v4 = vmax.f32 %v1804_v24, 0.0 }
 0x44a   : > { %v2586_v22 = vpop.f32.mrf.mxu1 }
 0x44b   : > { %v1805_v56 = vadd.f32 %v2586_v22, %v3499_v61  ;;  %2591 = vmatprep.mubr.msk.bf16.mxu0 %vm1588_vm1, %v1818_v40  ;;  %v1810_v44 = vmax.f32 %v1802_v57, 0.0  ;;  %v2073_v22 = vld [vmem:[%s3681_s15 + $0x18] sm:$0xff] }
 0x44c   : > { %v1786_v1 = vpop.f32.mrf.mxu1  ;;  %2592 = vmatmul.mubr.msk.bf16.vlgmr.msra.gmra.mxu0 %vm1588_vm1, %v1819_v41  ;;  %v2072_v41 = vld [vmem:[%s3681_s15 + $0x10] sm:$0xff] }
 0x44d   : > { %v1803_v42 = vadd.f32 %v1786_v1, %v3505_v28  ;;  %v1813_v43 = vmax.f32 %v1805_v56, 0.0  ;;  %v1861_v28 = vmul.f32 %v3338_v10, %v3486_v20  ;;  %v2079_v57 = vpack.c.bf16 %v2073_v22, %v2072_v41 }
 0x44f   : > { %v1811_v15 = vmax.f32 %v1803_v42, 0.0  ;;  %v1821_v51 = vpack.c.bf16 %v1813_v43, %v1812_v4  ;;  %v1869_v10 = vadd.f32 %v1861_v28, %v3463_v9  ;;  %2615 = vmatprep.subr.bf16.mxu0 %v2079_v57 }
 0x450   : > { %2616 = vmatpush3.bf16.msra.mxu0 %v2079_v57 }
 0x451   : > { %v1820_v32 = vpack.c.bf16 %v1811_v15, %v1810_v44 }
 0x453   : > { %2595 = vmatprep.mubr.msk.bf16.mxu0 %vm1588_vm1, %v1820_v32 }
 0x454   : > { %2596 = vmatmul.mubr.msk.bf16.gmra.mxu0 %vm1588_vm1, %v1821_v51 }
 0x50c   : > { %v2593_v61 = vpop.f32.mrf.mxu0 }
 0x50d   : > { %v1932_v38 = vadd.f32 %v2593_v61, %v3440_v50 }
 0x50e   : > { %v1923_v19 = vpop.f32.mrf.mxu0 }
 0x50f   : > { %v1924_v52 = vadd.f32 %v1923_v19, %v1869_v10  ;;  %v1963_v13 = vadd.f32 %v2441_v2, %v1932_v38 }
 0x510   : > { %v2594_v39 = vpop.f32.mrf.mxu0 }
 0x511   : > { %v1935_v36 = vadd.f32 %v2594_v39, %v3445_v33  ;;  %v1961_v12 = vadd.f32 %v2441_v2, %v1924_v52 }
 0x512   : > { %v1926_v49 = vpop.f32.mrf.mxu0 }
 0x513   : > { %v1927_v16 = vadd.f32 %v1926_v49, %v1870_v23 }
 0x514   : > { %v2597_v54 = vpop.f32.mrf.mxu0 }
 0x515   : > { %v1948_v31 = vadd.f32 %v2597_v54, %v3369_v47  ;;  %v1962_v60 = vadd.f32 %v2441_v2, %v1927_v16  ;;  %v2117_v16 = vmul.f32 %v3341_v5, %v3486_v20 }
 0x516   : > { %v1939_v27 = vpop.f32.mrf.mxu0 }
 0x517   : > { %v1940_v45 = vadd.f32 %v1939_v27, %v3411_v7  ;;  %v3571_v47 = vadd.f32 %v2441_v2, %v1948_v31  ;;  %v1964_v7 = vadd.f32 %v2441_v2, %v1935_v36 }
 0x518   : > { %v2598_v6 = vpop.f32.mrf.mxu0 }
 0x519   : > { %v1951_v30 = vadd.f32 %v2598_v6, %v3379_v18  ;;  %v3576_v8 = vadd.f32 %v2441_v2, %v1940_v45  ;;  %v1970_v55 = vpack.c.bf16 %v1964_v7, %v1963_v13 }
 0x51a   : > { %v1942_v17 = vpop.f32.mrf.mxu0 }
 0x51b   : > { %v3573_v3 = vadd.f32 %v2441_v2, %v1951_v30  ;;  %v1943_v33 = vadd.f32 %v1942_v17, %v3419_v63  ;;  %v1969_v63 = vpack.c.bf16 %v1962_v60, %v1961_v12 }
 0x51d   : > { %v1972_v18 = vpack.c.bf16 %v3573_v3, %v3571_v47  ;;  %v3580_v50 = vadd.f32 %v2441_v2, %v1943_v33  ;;  %v2118_v33 = vmul.f32 %v3341_v5, %v3483_v29 }
 0x51f   : > { %1983 = vrot.lane.b32.xlu1 %v1972_v18, %s2750_s29  ;;  %v1971_v9 = vpack.c.bf16 %v3580_v50, %v3576_v8 }
 0x521   : > { %1981 = vrot.lane.b32.xlu0 %v1971_v9, %s2750_s29  ;;  %v2126_v9 = vadd.f32 %v2118_v33, %v3461_v46 }
 0x523   : > { %1979 = vrot.lane.b32.xlu1 %v1970_v55, %s2750_s29 }
 0x525   : > { %1977 = vrot.lane.b32.xlu0 %v1969_v63, %s2750_s29  ;;  %s710_s29 = scalar_lea.vmem %s3684_s18, %s2870_s23 }
 0x591   : > { %v1984_v35 = vpop.permute.xlu1 %1983 }
 0x592   : > { %2599 = vmatprep.subr.bf16.mxu1 %v1984_v35 }
 0x593   : > { %2600 = vmatpush3.bf16.msra.mxu1 %v1984_v35  ;;  %v1982_v34 = vpop.permute.xlu0 %1981 }
 0x594   : > { %2601 = vmatprep.subr.bf16.mxu1 %v1982_v34 }
 0x595   : > { %v1980_v14 = vpop.permute.xlu1 %1979 }
 0x597   : > { %2602 = vmatpush3.bf16.msra.mxu1 %v1982_v34  ;;  %v1978_v40 = vpop.permute.xlu0 %1977 }
 0x598   : > { %2603 = vmatprep.subr.bf16.mxu1 %v1980_v14 }
 0x59b   : > { %2604 = vmatpush3.bf16.msra.mxu1 %v1980_v14 }
 0x59c   : > { %2605 = vmatprep.subr.bf16.mxu1 %v1978_v40 }
 0x59f   : > { %2606 = vmatpush3.bf16.msra.mxu1 %v1978_v40 }
 0x5a0   : > { %2627 = vmatprep.subr.bf16.mxu1 %v2079_v57 }
 0x5a2   : > { %2608 = vmatmul.mubr.msk.bf16.vlgmr.msra.gmra.mxu1 %vm1102_vm0, %v3534_v53  ;;  %v2070_v53 = vld [vmem:[%s3681_s15] sm:$0xff] }
 0x5a3   : > { %2611 = vmatprep.mubr.msk.bf16.mxu1 %vm1102_vm0, %v3537_v62  ;;  %2629 = vmatpush3.bf16.msra.mxu1 %v2079_v57  ;;  %v2071_v62 = vld [vmem:[%s3681_s15 + $0x8] sm:$0xff] }
 0x5aa   : > { %2612 = vmatmul.mubr.msk.bf16.gmra.mxu1 %vm1102_vm0, %v3544_v58  ;;  %v2078_v58 = vpack.c.bf16 %v2071_v62, %v2070_v53 }
 0x5ac   : > { %2617 = vmatprep.subr.bf16.mxu0 %v2078_v58  ;;  %2628 = vmatprep.subr.bf16.mxu1 %v2078_v58 }
 0x5ad   : > { %2618 = vmatpush3.bf16.msra.mxu0 %v2078_v58  ;;  %2630 = vmatpush3.bf16.msra.mxu1 %v2078_v58 }
 0x662   : > { %v2609_v56 = vpop.f32.mrf.mxu1 }
 0x663   : > { %v2056_v24 = vadd.f32 %v2609_v56, %v1963_v13 }
 0x664   : > { %v2023_v1 = vpop.f32.mrf.mxu1 }
 0x665   : > { %v2064_v42 = vmax.f32 %v2056_v24, 0.0  ;;  %v2054_v43 = vadd.f32 %v2023_v1, %v1961_v12 }
 0x666   : > { %v2610_v44 = vpop.f32.mrf.mxu1 }
 0x667   : > { %2244 = vst.msk [vmem:[%s3610_s25 + $0x10] sm:$0xff] %vm1588_vm1, %v2064_v42  ;;  %v2062_v15 = vmax.f32 %v2054_v43, 0.0  ;;  %v2057_v4 = vadd.f32 %v2610_v44, %v1964_v7  ;;  %v2125_v7 = vadd.f32 %v2117_v16, %v3465_v59 }
 0x668   : > { %v2026_v32 = vpop.f32.mrf.mxu1 }
 0x669   : > { %2242 = vst.msk [vmem:[%s3610_s25] sm:$0xff] %vm1588_vm1, %v2062_v15  ;;  %v2065_v51 = vmax.f32 %v2057_v4, 0.0  ;;  %v2055_v61 = vadd.f32 %v2026_v32, %v1962_v60 }
 0x66a   : > { %v2613_v19 = vpop.f32.mrf.mxu1 }
 0x66b   : > { %2245 = vst.msk [vmem:[%s3610_s25 + $0x18] sm:$0xff] %vm1588_vm1, %v2065_v51  ;;  %v2063_v39 = vmax.f32 %v2055_v61, 0.0  ;;  %v2060_v49 = vadd.f32 %v2613_v19, %v3571_v47  ;;  %v2075_v31 = vpack.c.bf16 %v2065_v51, %v2064_v42 }
 0x66c   : > { %v2039_v54 = vpop.f32.mrf.mxu1 }
 0x66d   : > { %v2074_v25 = vpack.c.bf16 %v2063_v39, %v2062_v15  ;;  %2243 = vst.msk [vmem:[%s3610_s25 + $0x8] sm:$0xff] %vm1588_vm1, %v2063_v39  ;;  %v2068_v28 = vmax.f32 %v2060_v49, 0.0  ;;  %v2058_v27 = vadd.f32 %v2039_v54, %v3576_v8 }
 0x66e   : > { %v2614_v6 = vpop.f32.mrf.mxu1 }
 0x66f   : > { %2248 = vst.msk [vmem:[%s3610_s25 + $0x30] sm:$0xff] %vm1588_vm1, %v2068_v28  ;;  %v2066_v36 = vmax.f32 %v2058_v27, 0.0  ;;  %v2061_v23 = vadd.f32 %v2614_v6, %v3573_v3  ;;  %2619 = vmatprep.mubr.msk.bf16.mxu0 %vm1588_vm1, %v2074_v25  ;;  %v2450_v3 = vld [vmem:[%s3683_s17] ss:$0 sm:$0xff] }
 0x670   : > { %v2042_v45 = vpop.f32.mrf.mxu1  ;;  %2620 = vmatmul.mubr.msk.bf16.vlgmr.msra.gmra.mxu0 %vm1588_vm1, %v2075_v31 }
 0x671   : > { %2246 = vst.msk [vmem:[%s3610_s25 + $0x20] sm:$0xff] %vm1588_vm1, %v2066_v36  ;;  %v2069_v30 = vmax.f32 %v2061_v23, 0.0  ;;  %v2059_v38 = vadd.f32 %v2042_v45, %v3580_v50 }
 0x673   : > { %2249 = vst.msk [vmem:[%s3610_s25 + $0x38] sm:$0xff] %vm1588_vm1, %v2069_v30  ;;  %v2067_v2 = vmax.f32 %v2059_v38, 0.0  ;;  %v2077_v17 = vpack.c.bf16 %v2069_v30, %v2068_v28 }
 0x675   : > { %v2076_v10 = vpack.c.bf16 %v2067_v2, %v2066_v36  ;;  %2247 = vst.msk [vmem:[%s3610_s25 + $0x28] sm:$0xff] %vm1588_vm1, %v2067_v2 }
 0x677   : > { %2623 = vmatprep.mubr.msk.bf16.mxu1 %vm1588_vm1, %v2076_v10 }
 0x678   : > { %2624 = vmatmul.mubr.msk.bf16.vlgmr.msra.gmra.mxu1 %vm1588_vm1, %v2077_v17 }
 0x730   : > { %v2621_v47 = vpop.f32.mrf.mxu0 }
 0x731   : > { %v2188_v52 = vadd.f32 %v2621_v47, %v3442_v21 }
 0x732   : > { %v2179_v8 = vpop.f32.mrf.mxu0 }
 0x733   : > { %v2219_v18 = vadd.f32 %v2450_v3, %v2188_v52  ;;  %v2180_v50 = vadd.f32 %v2179_v8, %v2125_v7 }
 0x734   : > { %v2622_v13 = vpop.f32.mrf.mxu0 }
 0x735   : > { %2722 = vtanh.f32 %v2219_v18  ;;  %v2217_v60 = vadd.f32 %v2450_v3, %v2180_v50  ;;  %v2191_v20 = vadd.f32 %v2622_v13, %v3447_v26 }
 0x736   : > { %v2182_v12 = vpop.f32.mrf.mxu0 }
 0x737   : > { %2724 = vtanh.f32 %v2217_v60  ;;  %v2220_v55 = vadd.f32 %v2450_v3, %v2191_v20  ;;  %v2183_v63 = vadd.f32 %v2182_v12, %v2126_v9 }
 0x738   : > { %v2625_v35 = vpop.f32.mrf.mxu1 }
 0x739   : > { %2726 = vtanh.f32 %v2220_v55  ;;  %v2218_v5 = vadd.f32 %v2450_v3, %v2183_v63  ;;  %v2204_v21 = vadd.f32 %v2625_v35, %v3371_v0 }
 0x73a   : > { %v2195_v59 = vpop.f32.mrf.mxu1 }
 0x73b   : > { %2728 = vtanh.f32 %v2218_v5  ;;  %v2223_v29 = vadd.f32 %v2450_v3, %v2204_v21  ;;  %v2196_v34 = vadd.f32 %v2195_v59, %v3413_v37 }
 0x73c   : > { %v2626_v14 = vpop.f32.mrf.mxu1 }
 0x73d   : > { %2730 = vtanh.f32 %v2223_v29  ;;  %v2221_v26 = vadd.f32 %v2450_v3, %v2196_v34  ;;  %v2207_v46 = vadd.f32 %v2626_v14, %v3381_v11 }
 0x73e   : > { %v2198_v40 = vpop.f32.mrf.mxu1 }
 0x73f   : > { %2732 = vtanh.f32 %v2221_v26  ;;  %v2224_v41 = vadd.f32 %v2450_v3, %v2207_v46  ;;  %v2199_v22 = vadd.f32 %v2198_v40, %v3421_v48 }
 0x741   : > { %2734 = vtanh.f32 %v2224_v41  ;;  %v2222_v0 = vadd.f32 %v2450_v3, %v2199_v22 }
 0x742   : > { %v2723_v57 = vpop.eup %2722 }
 0x743   : > { %2236 = vst.msk [vmem:[%s710_s29 + $0x10] sm:$0xff] %vm2233_vm2, %v2723_v57  ;;  %2736 = vtanh.f32 %v2222_v0 }
 0x744   : > { %v2725_v37 = vpop.eup %2724 }
 0x745   : > { %2234 = vst.msk [vmem:[%s710_s29] sm:$0xff] %vm2233_vm2, %v2725_v37 }
 0x746   : > { %v2727_v11 = vpop.eup %2726 }
 0x747   : > { %2237 = vst.msk [vmem:[%s710_s29 + $0x18] sm:$0xff] %vm2233_vm2, %v2727_v11 }
 0x748   : > { %v2729_v53 = vpop.eup %2728 }
 0x749   : > { %2235 = vst.msk [vmem:[%s710_s29 + $0x8] sm:$0xff] %vm2233_vm2, %v2729_v53 }
 0x74a   : > { %v2731_v48 = vpop.eup %2730 }
 0x74b   : > { %2240 = vst.msk [vmem:[%s710_s29 + $0x30] sm:$0xff] %vm2233_vm2, %v2731_v48 }
 0x74c   : > { %v2733_v62 = vpop.eup %2732 }
 0x74d   : > { %2238 = vst.msk [vmem:[%s710_s29 + $0x20] sm:$0xff] %vm2233_vm2, %v2733_v62 }
 0x74e   : > { %v2735_v58 = vpop.eup %2734 }
 0x74f   : > { %2241 = vst.msk [vmem:[%s710_s29 + $0x38] sm:$0xff] %vm2233_vm2, %v2735_v58 }
 0x750   : > { %v2737_v56 = vpop.eup %2736 }
 0x751   : > { %2239 = vst.msk [vmem:[%s710_s29 + $0x28] sm:$0xff] %vm2233_vm2, %v2737_v56 }
 0x752 PF: > { %s30_s0 = sadd.s32 1, %s2744_s0  }
 0x753   : > { %p27_p4 = scmp.ge.s32.totalorder %s30_s0, 4  }
 0x755   :  { %29 = sbr.rel (!%p27_p4) target bundleno = 5 (0x5), region = 149 }

</bundles_post_ra>
